<compile_context>
chip_gen: v6e
topology: v6e:2x2x1
jax: 0.10.0
libtpu: 0.0.40
codegen_flags: <defaults>
</compile_context>

<pallas_src>
import jax
import jax.numpy as jnp
from jax.experimental import pallas as pl
from jax.experimental.pallas import tpu as pltpu


# ---------------------------------------------------------------------------
# helpers
# ---------------------------------------------------------------------------
def _gates_to_state(gates, c_prev, H):
    """PyTorch LSTM gate order: i, f, g, o."""
    i_g = jax.nn.sigmoid(gates[:, 0 * H:1 * H])
    f_g = jax.nn.sigmoid(gates[:, 1 * H:2 * H])
    g_g = jnp.tanh(gates[:, 2 * H:3 * H])
    o_g = jax.nn.sigmoid(gates[:, 3 * H:4 * H])
    c_new = f_g * c_prev + i_g * g_g
    h_new = o_g * jnp.tanh(c_new)
    return h_new, c_new


def _pick_tile_v(v_pad, tile_v):
    """Largest multiple of 128 that divides v_pad and is <= tile_v (>=128)."""
    tile_v = max(128, (tile_v // 128) * 128)
    best = 128
    t = 128
    upper = min(tile_v, v_pad)
    while t <= upper:
        if v_pad % t == 0:
            best = t
        t += 128
    return best


# ---------------------------------------------------------------------------
# Fused kernel: embedding gather + single-step stacked LSTM (+ fc, tiled over vocab)
# ---------------------------------------------------------------------------
def _make_fused_kernel(num_layers: int, hidden_size: int, embed_size: int,
                       batch: int, hbm_gather: bool):
    L, H, E, B = num_layers, hidden_size, embed_size, batch

    def kernel(*refs):
        # ---- unpack: (prefetch, inputs..., outputs..., scratch...) --------
        tok_ref = refs[0]                       # SMEM (B,) int32
        emb = refs[1]                           # (V,E) f32: VMEM block or HBM (pl.ANY)
        lrefs = refs[2:2 + 2 * L]               # per layer: w_cat (in+H,4H) bf16, bias (1,4H) f32
        h0_ref = refs[2 + 2 * L]                # (L,B,H) f32
        c0_ref = refs[3 + 2 * L]                # (L,B,H) f32
        fcw_ref = refs[4 + 2 * L]               # (H,tv)  bf16   (streamed per vocab tile)
        fcb_ref = refs[5 + 2 * L]               # (1,tv)  f32    (streamed per vocab tile)
        pred_ref = refs[6 + 2 * L]              # (B,tv)  f32 output tile
        hout_ref = refs[7 + 2 * L]              # (L,B,H) f32 output (resident across grid)
        cout_ref = refs[8 + 2 * L]              # (L,B,H) f32 output (resident across grid)
        xtop_ref = refs[9 + 2 * L]              # VMEM (B,H) bf16 scratch (persists across grid)
        if hbm_gather:
            emb_buf = refs[10 + 2 * L]          # VMEM (B,E) f32 scratch
            sem = refs[11 + 2 * L]              # DMA sems (B,)

        # ---- LSTM step: only on the first vocab tile -----------------------
        @pl.when(pl.program_id(0) == 0)
        def _lstm_step():
            if hbm_gather:
                # issue B row DMAs from the HBM table (B*E*4 bytes, not V*E)
                copies = []
                for b in range(B):
                    cp = pltpu.make_async_copy(
                        emb.at[pl.ds(tok_ref[b], 1)],     # (1,E) row in HBM
                        emb_buf.at[pl.ds(b, 1)],          # (1,E) row in VMEM
                        sem.at[b])
                    cp.start()
                    copies.append(cp)

                # overlap: layer-0 recurrent half runs while the gather DMAs are in flight
                w0 = lrefs[0][...]                        # (E+H, 4H) bf16
                b0 = lrefs[1][...]                        # (1, 4H)  f32
                h_prev = h0_ref[0]
                c_prev = c0_ref[0]
                gates = jnp.dot(h_prev.astype(jnp.bfloat16), w0[E:, :],
                                preferred_element_type=jnp.float32) + b0

                for cp in copies:
                    cp.wait()
                x = emb_buf[...].astype(jnp.bfloat16)     # (B,E)
                gates = gates + jnp.dot(x, w0[:E, :],
                                        preferred_element_type=jnp.float32)

                h_new, c_new = _gates_to_state(gates, c_prev, H)
                hout_ref[0] = h_new
                cout_ref[0] = c_new
                x = h_new.astype(jnp.bfloat16)
                start_layer = 1
            else:
                # VMEM-resident table: gather B rows with dynamic-slice loads
                rows = [emb[pl.ds(tok_ref[b], 1), :] for b in range(B)]
                x = jnp.concatenate(rows, axis=0).astype(jnp.bfloat16)   # (B,E)
                start_layer = 0

            # remaining layers: single fused matmul per layer (K = in+H)
            for l in range(start_layer, L):
                w_cat = lrefs[2 * l + 0][...]             # (in+H, 4H) bf16
                bias = lrefs[2 * l + 1][...]              # (1, 4H)    f32
                h_prev = h0_ref[l]
                c_prev = c0_ref[l]
                xh = jnp.concatenate([x, h_prev.astype(jnp.bfloat16)], axis=-1)
                gates = jnp.dot(xh, w_cat,
                                preferred_element_type=jnp.float32) + bias
                h_new, c_new = _gates_to_state(gates, c_prev, H)
                hout_ref[l] = h_new
                cout_ref[l] = c_new
                # inter-layer dropout = identity in eval mode
                x = h_new.astype(jnp.bfloat16)

            xtop_ref[...] = x                             # top-layer h, reused by every tile

        # ---- fc projection: one vocab tile per grid step --------------------
        pred_ref[...] = (jnp.dot(xtop_ref[...], fcw_ref[...],
                                 preferred_element_type=jnp.float32)
                         + fcb_ref[...])

    return kernel


# ---------------------------------------------------------------------------
# Wrapper (one decode step)
# ---------------------------------------------------------------------------
def decoder_forward(target_sequence, hidden, cell, encoder_outputs, prepared, *,
                    num_layers, hidden_size, input_size, embedding_size,
                    tile_v=1024, embed_table_vmem_limit=4 * 1024 * 1024):
    """Pallas implementation of Decoder.forward (eval mode).

    target_sequence: (B,) int token ids
    hidden, cell:    anything reshapeable to (num_layers, B, hidden_size)
    encoder_outputs: unused by the reference forward (attention never applied)
    prepared:        output of prepare_params() (pre-transposed / fused bf16 weights)
    returns: (prediction (B, V), hidden (L, B, H), cell (L, B, H))
    """
    del encoder_outputs  # unused by the reference module's forward
    B = target_sequence.shape[0]
    V, E, H, L = input_size, embedding_size, hidden_size, num_layers
    V_pad = prepared["fc_w_t"].shape[1]

    # glue: mirror `hidden.view(num_layers, B, hidden_size)`
    hidden = jnp.reshape(hidden, (L, B, H)).astype(jnp.float32)
    cell = jnp.reshape(cell, (L, B, H)).astype(jnp.float32)
    # nn.Embedding would raise on out-of-range ids; clamp so the gather stays in bounds.
    tok = jnp.clip(target_sequence.astype(jnp.int32), 0, V - 1)

    table_bytes = V * E * 4                       # f32 table
    use_vmem_table = table_bytes <= embed_table_vmem_limit
    tv = _pick_tile_v(V_pad, tile_v)
    num_tiles = V_pad // tv

    def _full(shape):
        return pl.BlockSpec(shape, lambda j, tok_ref, _nd=len(shape): (0,) * _nd)

    # ---- inputs / specs ------------------------------------------------------
    inputs = [prepared["embedding"]]
    if use_vmem_table:
        in_specs = [_full((V, E))]                               # table resident in VMEM
    else:
        in_specs = [pl.BlockSpec(memory_space=pl.ANY)]           # table stays in HBM
    for l in range(L):
        w_cat = prepared[f"w_cat_{l}"]
        bias = prepared[f"b_{l}"]
        inputs += [w_cat, bias]
        in_specs += [_full(w_cat.shape), _full(bias.shape)]
    inputs += [hidden, cell, prepared["fc_w_t"], prepared["fc_b"]]
    in_specs += [
        _full((L, B, H)), _full((L, B, H)),
        pl.BlockSpec((H, tv), lambda j, tok_ref: (0, j)),        # streamed weight tile
        pl.BlockSpec((1, tv), lambda j, tok_ref: (0, j)),        # streamed bias tile
    ]

    out_specs = (
        pl.BlockSpec((B, tv), lambda j, tok_ref: (0, j)),        # prediction tile (lane-dense)
        _full((L, B, H)),                                        # h_out (resident across grid)
        _full((L, B, H)),                                        # c_out (resident across grid)
    )
    out_shape = (
        jax.ShapeDtypeStruct((B, V_pad), jnp.float32),
        jax.ShapeDtypeStruct((L, B, H), jnp.float32),
        jax.ShapeDtypeStruct((L, B, H), jnp.float32),
    )

    scratch_shapes = [pltpu.VMEM((B, H), jnp.bfloat16)]          # x_top (persists across grid)
    if not use_vmem_table:
        scratch_shapes += [pltpu.VMEM((B, E), jnp.float32),      # gathered embedding rows
                           pltpu.SemaphoreType.DMA((B,))]

    grid_spec = pltpu.PrefetchScalarGridSpec(
        num_scalar_prefetch=1,
        grid=(num_tiles,),
        in_specs=in_specs,
        out_specs=out_specs,
        scratch_shapes=scratch_shapes,
    )

    pred_full, h_out, c_out = pl.pallas_call(
        _make_fused_kernel(L, H, E, B, hbm_gather=not use_vmem_table),
        grid_spec=grid_spec,
        out_shape=out_shape,
        # "arbitrary": x_top scratch + the pl.when(pid==0) LSTM step carry state across
        # the vocab grid, which megacore ("parallel") sharding would break.
        compiler_params=pltpu.CompilerParams(
            dimension_semantics=("arbitrary",)),
    )(tok, *inputs)

    pred = pred_full if V_pad == V else pred_full[:, :V]
    return pred, h_out, c_out


# ---------------------------------------------------------------------------
# Parameters: PyTorch-shaped init + one-time preparation
# ---------------------------------------------------------------------------
def init_torch_like_params(key, *, input_size, hidden_size, embedding_size, num_layers):
    """Deterministic synthetic parameters matching nn.Embedding / nn.LSTM / nn.Linear shapes."""
    params = {}
    keys = jax.random.split(key, 4 + 4 * num_layers)
    k = iter(keys)
    scale = 1.0 / jnp.sqrt(jnp.float32(hidden_size))

    params["embedding"] = jax.random.normal(next(k), (input_size, embedding_size),
                                            jnp.float32) * 0.1
    for l in range(num_layers):
        in_f = embedding_size if l == 0 else hidden_size
        params[f"w_ih_{l}"] = jax.random.uniform(next(k), (4 * hidden_size, in_f),
                                                 jnp.float32, -scale, scale)
        params[f"w_hh_{l}"] = jax.random.uniform(next(k), (4 * hidden_size, hidden_size),
                                                 jnp.float32, -scale, scale)
        params[f"b_ih_{l}"] = jax.random.uniform(next(k), (4 * hidden_size,),
                                                 jnp.float32, -scale, scale)
        params[f"b_hh_{l}"] = jax.random.uniform(next(k), (4 * hidden_size,),
                                                 jnp.float32, -scale, scale)
    params["fc_w"] = jax.random.uniform(next(k), (input_size, hidden_size),
                                        jnp.float32, -scale, scale)
    params["fc_b"] = jax.random.uniform(next(k), (input_size,),
                                        jnp.float32, -scale, scale)
    return params


def prepare_params(raw, *, num_layers, embedding_size, hidden_size):
    """One-time conversion (NOT per decode step):
       - fuse w_ih.T and w_hh.T into one (in+H, 4H) bf16 matrix per layer,
       - pre-sum biases,
       - transpose + bf16-cast the fc weight and zero-pad the vocab dim to a multiple of 128."""
    H = hidden_size
    prepared = {"embedding": raw["embedding"].astype(jnp.float32)}           # (V, E) f32
    for l in range(num_layers):
        w_cat = jnp.concatenate([raw[f"w_ih_{l}"].T, raw[f"w_hh_{l}"].T], axis=0)
        prepared[f"w_cat_{l}"] = w_cat.astype(jnp.bfloat16)                  # (in+H, 4H)
        prepared[f"b_{l}"] = (raw[f"b_ih_{l}"] + raw[f"b_hh_{l}"])[None, :].astype(jnp.float32)
    V = raw["fc_w"].shape[0]
    V_pad = ((V + 127) // 128) * 128
    fc_w_t = raw["fc_w"].T.astype(jnp.bfloat16)                              # (H, V)
    fc_b = raw["fc_b"][None, :].astype(jnp.float32)                          # (1, V)
    if V_pad != V:
        fc_w_t = jnp.pad(fc_w_t, ((0, 0), (0, V_pad - V)))
        fc_b = jnp.pad(fc_b, ((0, 0), (0, V_pad - V)))
    prepared["fc_w_t"] = fc_w_t                                              # (H, V_pad)
    prepared["fc_b"] = fc_b                                                  # (1, V_pad)
    return jax.tree_util.tree_map(jnp.asarray, prepared)


# ---------------------------------------------------------------------------
# Pure-JAX reference (mirrors the PyTorch forward in eval mode + the kernel's bf16 casts)
# ---------------------------------------------------------------------------
def decoder_reference(tok, hidden, cell, prepared, *, num_layers, hidden_size,
                      embedding_size, input_size):
    L, H, E, V = num_layers, hidden_size, embedding_size, input_size
    B = tok.shape[0]
    f32 = jnp.float32
    hidden = jnp.reshape(hidden, (L, B, H)).astype(f32)
    cell = jnp.reshape(cell, (L, B, H)).astype(f32)
    tok = jnp.clip(tok.astype(jnp.int32), 0, V - 1)

    x = prepared["embedding"][tok]                                    # (B, E) f32
    x = x.astype(jnp.bfloat16).astype(f32)                            # mirror kernel's bf16 operand
    new_h, new_c = [], []
    for l in range(L):
        in_f = E if l == 0 else H
        w_cat = prepared[f"w_cat_{l}"].astype(f32)
        w_x, w_h = w_cat[:in_f], w_cat[in_f:]
        h_b = hidden[l].astype(jnp.bfloat16).astype(f32)
        gates = x @ w_x + h_b @ w_h + prepared[f"b_{l}"]
        i_g = jax.nn.sigmoid(gates[:, 0 * H:1 * H])
        f_g = jax.nn.sigmoid(gates[:, 1 * H:2 * H])
        g_g = jnp.tanh(gates[:, 2 * H:3 * H])
        o_g = jax.nn.sigmoid(gates[:, 3 * H:4 * H])
        c_n = f_g * cell[l] + i_g * g_g
        h_n = o_g * jnp.tanh(c_n)
        new_h.append(h_n)
        new_c.append(c_n)
        x = h_n.astype(jnp.bfloat16).astype(f32)                      # mirror kernel hand-off
    pred = x @ prepared["fc_w_t"].astype(f32)[:, :V] + prepared["fc_b"][:, :V]
    return pred, jnp.stack(new_h), jnp.stack(new_c)


# ---------------------------------------------------------------------------
if __name__ == "__main__":
    # Small but lane-aligned shapes (H, E, V multiples of 128 for lane-dense layout).
    INPUT_SIZE = 512       # vocab size V
    HIDDEN_SIZE = 128      # H
    EMBEDDING_SIZE = 128   # E
    NUM_LAYERS = 2
    BATCH = 8
    SRC_LEN = 8

    key = jax.random.PRNGKey(0)
    k_p, k_tok, k_h, k_c, k_enc = jax.random.split(key, 5)

    raw = init_torch_like_params(k_p, input_size=INPUT_SIZE, hidden_size=HIDDEN_SIZE,
                                 embedding_size=EMBEDDING_SIZE, num_layers=NUM_LAYERS)
    prepared = prepare_params(raw, num_layers=NUM_LAYERS,
                              embedding_size=EMBEDDING_SIZE, hidden_size=HIDDEN_SIZE)

    target_sequence = jax.random.randint(k_tok, (BATCH,), 0, INPUT_SIZE, jnp.int32)
    hidden = jax.random.normal(k_h, (NUM_LAYERS, BATCH, HIDDEN_SIZE), jnp.float32)
    cell = jax.random.normal(k_c, (NUM_LAYERS, BATCH, HIDDEN_SIZE), jnp.float32)
    encoder_outputs = jax.random.normal(k_enc, (SRC_LEN, BATCH, HIDDEN_SIZE), jnp.float32)

    # Path 1 (default): VMEM-resident embedding table, single large vocab tile.
    pred, h_out, c_out = decoder_forward(
        target_sequence, hidden, cell, encoder_outputs, prepared,
        num_layers=NUM_LAYERS, hidden_size=HIDDEN_SIZE,
        input_size=INPUT_SIZE, embedding_size=EMBEDDING_SIZE, tile_v=1024)
    jax.block_until_ready((pred, h_out, c_out))

    # Path 2: force the HBM DMA-gather path (large-table fallback) + multi-tile vocab grid,
    # exercising the pl.when(pid==0) / x_top-scratch persistence across grid steps.
    pred2, h_out2, c_out2 = decoder_forward(
        target_sequence, hidden, cell, encoder_outputs, prepared,
        num_layers=NUM_LAYERS, hidden_size=HIDDEN_SIZE,
        input_size=INPUT_SIZE, embedding_size=EMBEDDING_SIZE,
        tile_v=128, embed_table_vmem_limit=0)
    jax.block_until_ready((pred2, h_out2, c_out2))

    # correctness check vs pure-JAX reference (same bf16-rounded weights, f32 accumulation)
    pred_r, h_r, c_r = decoder_reference(
        target_sequence, hidden, cell, prepared,
        num_layers=NUM_LAYERS, hidden_size=HIDDEN_SIZE,
        embedding_size=EMBEDDING_SIZE, input_size=INPUT_SIZE)

    assert pred.shape == (BATCH, INPUT_SIZE)
    assert h_out.shape == (NUM_LAYERS, BATCH, HIDDEN_SIZE)
    assert c_out.shape == (NUM_LAYERS, BATCH, HIDDEN_SIZE)
    for p, h, c in ((pred, h_out, c_out), (pred2, h_out2, c_out2)):
        assert jnp.allclose(p, pred_r, atol=2e-3, rtol=2e-3)
        assert jnp.allclose(h, h_r, atol=2e-3, rtol=2e-3)
        assert jnp.allclose(c, c_r, atol=2e-3, rtol=2e-3)

    print("KERNEL_OK")
</pallas_src>

<mosaic_0001>
module attributes {stable_mosaic.version = 11 : i64} {
  func.func @kernel(%arg0: i32, %arg1: memref<8xi32, #tpu.memory_space<smem>>, %arg2: memref<512x128xf32, #tpu.memory_space<vmem>>, %arg3: memref<256x512xbf16, #tpu.memory_space<vmem>>, %arg4: memref<1x512xf32, #tpu.memory_space<vmem>>, %arg5: memref<256x512xbf16, #tpu.memory_space<vmem>>, %arg6: memref<1x512xf32, #tpu.memory_space<vmem>>, %arg7: memref<2x8x128xf32, #tpu.memory_space<vmem>>, %arg8: memref<2x8x128xf32, #tpu.memory_space<vmem>>, %arg9: memref<128x512xbf16, #tpu.memory_space<vmem>>, %arg10: memref<1x512xf32, #tpu.memory_space<vmem>>, %arg11: memref<8x512xf32, #tpu.memory_space<vmem>>, %arg12: memref<2x8x128xf32, #tpu.memory_space<vmem>>, %arg13: memref<2x8x128xf32, #tpu.memory_space<vmem>>, %arg14: memref<8x128xbf16, #tpu.memory_space<vmem>>) attributes {dimension_semantics = [#tpu.dimension_semantics<arbitrary>], iteration_bounds = array<i64: 1>, scalar_prefetch = 1 : i64, scratch_operands = 1 : i64, tpu.core_type = #tpu.core_type<tc>, window_params = [{pipeline_mode = #tpu.pipeline_mode<synchronous>, transform_indices = @transform_0, window_bounds = array<i64: 512, 128>}, {pipeline_mode = #tpu.pipeline_mode<synchronous>, transform_indices = @transform_1, window_bounds = array<i64: 256, 512>}, {pipeline_mode = #tpu.pipeline_mode<synchronous>, transform_indices = @transform_2, window_bounds = array<i64: 1, 512>}, {pipeline_mode = #tpu.pipeline_mode<synchronous>, transform_indices = @transform_3, window_bounds = array<i64: 256, 512>}, {pipeline_mode = #tpu.pipeline_mode<synchronous>, transform_indices = @transform_4, window_bounds = array<i64: 1, 512>}, {pipeline_mode = #tpu.pipeline_mode<synchronous>, transform_indices = @transform_5, window_bounds = array<i64: 2, 8, 128>}, {pipeline_mode = #tpu.pipeline_mode<synchronous>, transform_indices = @transform_6, window_bounds = array<i64: 2, 8, 128>}, {transform_indices = @transform_7, window_bounds = array<i64: 128, 512>}, {transform_indices = @transform_8, window_bounds = array<i64: 1, 512>}, {transform_indices = @transform_9, window_bounds = array<i64: 8, 512>}, {pipeline_mode = #tpu.pipeline_mode<synchronous>, transform_indices = @transform_10, window_bounds = array<i64: 2, 8, 128>}, {pipeline_mode = #tpu.pipeline_mode<synchronous>, transform_indices = @transform_11, window_bounds = array<i64: 2, 8, 128>}]} {
    %c0_i32 = arith.constant 0 : i32
    %0 = arith.cmpi eq, %arg0, %c0_i32 : i32
    %1 = arith.extui %0 : i1 to i32
    %c0_i32_0 = arith.constant 0 : i32
    %2 = arith.cmpi ne, %1, %c0_i32_0 : i32
    scf.if %2 {
      %c0_8 = arith.constant 0 : index
      %10 = memref.load %arg1[%c0_8] : memref<8xi32, #tpu.memory_space<smem>>
      %11 = arith.index_cast %10 : i32 to index
      %c0_9 = arith.constant 0 : index
      %12 = vector.load %arg2[%11, %c0_9] : memref<512x128xf32, #tpu.memory_space<vmem>>, vector<1x128xf32>
      %c1 = arith.constant 1 : index
      %13 = memref.load %arg1[%c1] : memref<8xi32, #tpu.memory_space<smem>>
      %14 = arith.index_cast %13 : i32 to index
      %c0_10 = arith.constant 0 : index
      %15 = vector.load %arg2[%14, %c0_10] : memref<512x128xf32, #tpu.memory_space<vmem>>, vector<1x128xf32>
      %c2 = arith.constant 2 : index
      %16 = memref.load %arg1[%c2] : memref<8xi32, #tpu.memory_space<smem>>
      %17 = arith.index_cast %16 : i32 to index
      %c0_11 = arith.constant 0 : index
      %18 = vector.load %arg2[%17, %c0_11] : memref<512x128xf32, #tpu.memory_space<vmem>>, vector<1x128xf32>
      %c3 = arith.constant 3 : index
      %19 = memref.load %arg1[%c3] : memref<8xi32, #tpu.memory_space<smem>>
      %20 = arith.index_cast %19 : i32 to index
      %c0_12 = arith.constant 0 : index
      %21 = vector.load %arg2[%20, %c0_12] : memref<512x128xf32, #tpu.memory_space<vmem>>, vector<1x128xf32>
      %c4 = arith.constant 4 : index
      %22 = memref.load %arg1[%c4] : memref<8xi32, #tpu.memory_space<smem>>
      %23 = arith.index_cast %22 : i32 to index
      %c0_13 = arith.constant 0 : index
      %24 = vector.load %arg2[%23, %c0_13] : memref<512x128xf32, #tpu.memory_space<vmem>>, vector<1x128xf32>
      %c5 = arith.constant 5 : index
      %25 = memref.load %arg1[%c5] : memref<8xi32, #tpu.memory_space<smem>>
      %26 = arith.index_cast %25 : i32 to index
      %c0_14 = arith.constant 0 : index
      %27 = vector.load %arg2[%26, %c0_14] : memref<512x128xf32, #tpu.memory_space<vmem>>, vector<1x128xf32>
      %c6 = arith.constant 6 : index
      %28 = memref.load %arg1[%c6] : memref<8xi32, #tpu.memory_space<smem>>
      %29 = arith.index_cast %28 : i32 to index
      %c0_15 = arith.constant 0 : index
      %30 = vector.load %arg2[%29, %c0_15] : memref<512x128xf32, #tpu.memory_space<vmem>>, vector<1x128xf32>
      %c7 = arith.constant 7 : index
      %31 = memref.load %arg1[%c7] : memref<8xi32, #tpu.memory_space<smem>>
      %32 = arith.index_cast %31 : i32 to index
      %c0_16 = arith.constant 0 : index
      %33 = vector.load %arg2[%32, %c0_16] : memref<512x128xf32, #tpu.memory_space<vmem>>, vector<1x128xf32>
      %34 = tpu.concatenate %12, %15, %18, %21, %24, %27, %30, %33 in 0 : vector<1x128xf32>, vector<1x128xf32>, vector<1x128xf32>, vector<1x128xf32>, vector<1x128xf32>, vector<1x128xf32>, vector<1x128xf32>, vector<1x128xf32> -> vector<8x128xf32>
      %35 = arith.truncf %34 : vector<8x128xf32> to vector<8x128xbf16>
      %c0_17 = arith.constant 0 : index
      %c0_18 = arith.constant 0 : index
      %36 = vector.load %arg3[%c0_17, %c0_18] : memref<256x512xbf16, #tpu.memory_space<vmem>>, vector<256x512xbf16>
      %c0_19 = arith.constant 0 : index
      %c0_20 = arith.constant 0 : index
      %37 = vector.load %arg4[%c0_19, %c0_20] : memref<1x512xf32, #tpu.memory_space<vmem>>, vector<1x512xf32>
      %c0_21 = arith.constant 0 : index
      %c0_22 = arith.constant 0 : index
      %c0_23 = arith.constant 0 : index
      %38 = vector.load %arg7[%c0_21, %c0_22, %c0_23] : memref<2x8x128xf32, #tpu.memory_space<vmem>>, vector<1x8x128xf32>
      %39 = vector.shape_cast %38 : vector<1x8x128xf32> to vector<8x128xf32>
      %c0_24 = arith.constant 0 : index
      %c0_25 = arith.constant 0 : index
      %c0_26 = arith.constant 0 : index
      %40 = vector.load %arg8[%c0_24, %c0_25, %c0_26] : memref<2x8x128xf32, #tpu.memory_space<vmem>>, vector<1x8x128xf32>
      %41 = vector.shape_cast %40 : vector<1x8x128xf32> to vector<8x128xf32>
      %42 = arith.truncf %39 : vector<8x128xf32> to vector<8x128xbf16>
      %43 = tpu.concatenate %35, %42 in 1 : vector<8x128xbf16>, vector<8x128xbf16> -> vector<8x256xbf16>
      %cst_27 = arith.constant dense<0.000000e+00> : vector<8x512xf32>
      %44 = tpu.matmul %43, %36, %cst_27 {dimension_numbers = #tpu.dot_dimension_numbers<[1], [0], [0], [1], [0, 0, 1, 1], [], []>} : vector<8x256xbf16>, vector<256x512xbf16>, vector<8x512xf32> -> vector<8x512xf32>
      %45 = vector.broadcast %37 : vector<1x512xf32> to vector<8x512xf32>
      %46 = arith.addf %44, %45 : vector<8x512xf32>
      %47 = vector.extract_strided_slice %46 {offsets = [0, 0], sizes = [8, 128], strides = [1, 1]} : vector<8x512xf32> to vector<8x128xf32>
      %48 = arith.negf %47 : vector<8x128xf32>
      %49 = math.exp %48 : vector<8x128xf32>
      %cst_28 = arith.constant 1.000000e+00 : f32
      %50 = vector.broadcast %cst_28 : f32 to vector<8x128xf32>
      %51 = arith.addf %50, %49 : vector<8x128xf32>
      %52 = arith.divf %50, %51 : vector<8x128xf32>
      %53 = vector.extract_strided_slice %46 {offsets = [0, 128], sizes = [8, 128], strides = [1, 1]} : vector<8x512xf32> to vector<8x128xf32>
      %54 = arith.negf %53 : vector<8x128xf32>
      %55 = math.exp %54 : vector<8x128xf32>
      %cst_29 = arith.constant 1.000000e+00 : f32
      %56 = vector.broadcast %cst_29 : f32 to vector<8x128xf32>
      %57 = arith.addf %56, %55 : vector<8x128xf32>
      %58 = arith.divf %56, %57 : vector<8x128xf32>
      %59 = vector.extract_strided_slice %46 {offsets = [0, 256], sizes = [8, 128], strides = [1, 1]} : vector<8x512xf32> to vector<8x128xf32>
      %60 = math.tanh %59 : vector<8x128xf32>
      %61 = vector.extract_strided_slice %46 {offsets = [0, 384], sizes = [8, 128], strides = [1, 1]} : vector<8x512xf32> to vector<8x128xf32>
      %62 = arith.negf %61 : vector<8x128xf32>
      %63 = math.exp %62 : vector<8x128xf32>
      %cst_30 = arith.constant 1.000000e+00 : f32
      %64 = vector.broadcast %cst_30 : f32 to vector<8x128xf32>
      %65 = arith.addf %64, %63 : vector<8x128xf32>
      %66 = arith.divf %64, %65 : vector<8x128xf32>
      %67 = arith.mulf %58, %41 : vector<8x128xf32>
      %68 = arith.mulf %52, %60 : vector<8x128xf32>
      %69 = arith.addf %67, %68 : vector<8x128xf32>
      %70 = math.tanh %69 : vector<8x128xf32>
      %71 = arith.mulf %66, %70 : vector<8x128xf32>
      %c0_31 = arith.constant 0 : index
      %c0_32 = arith.constant 0 : index
      %c0_33 = arith.constant 0 : index
      %72 = vector.load %arg12[%c0_31, %c0_32, %c0_33] : memref<2x8x128xf32, #tpu.memory_space<vmem>>, vector<1x8x128xf32>
      %73 = vector.shape_cast %72 : vector<1x8x128xf32> to vector<8x128xf32>
      %74 = vector.shape_cast %71 : vector<8x128xf32> to vector<1x8x128xf32>
      tpu.vector_store %arg12[%c0_31, %c0_32, %c0_33], %74 {strides = array<i32>} : memref<2x8x128xf32, #tpu.memory_space<vmem>>, vector<1x8x128xf32>,
      %c0_34 = arith.constant 0 : index
      %c0_35 = arith.constant 0 : index
      %c0_36 = arith.constant 0 : index
      %75 = vector.load %arg13[%c0_34, %c0_35, %c0_36] : memref<2x8x128xf32, #tpu.memory_space<vmem>>, vector<1x8x128xf32>
      %76 = vector.shape_cast %75 : vector<1x8x128xf32> to vector<8x128xf32>
      %77 = vector.shape_cast %69 : vector<8x128xf32> to vector<1x8x128xf32>
      tpu.vector_store %arg13[%c0_34, %c0_35, %c0_36], %77 {strides = array<i32>} : memref<2x8x128xf32, #tpu.memory_space<vmem>>, vector<1x8x128xf32>,
      %78 = arith.truncf %71 : vector<8x128xf32> to vector<8x128xbf16>
      %c0_37 = arith.constant 0 : index
      %c0_38 = arith.constant 0 : index
      %79 = vector.load %arg5[%c0_37, %c0_38] : memref<256x512xbf16, #tpu.memory_space<vmem>>, vector<256x512xbf16>
      %c0_39 = arith.constant 0 : index
      %c0_40 = arith.constant 0 : index
      %80 = vector.load %arg6[%c0_39, %c0_40] : memref<1x512xf32, #tpu.memory_space<vmem>>, vector<1x512xf32>
      %c1_41 = arith.constant 1 : index
      %c0_42 = arith.constant 0 : index
      %c0_43 = arith.constant 0 : index
      %81 = vector.load %arg7[%c1_41, %c0_42, %c0_43] : memref<2x8x128xf32, #tpu.memory_space<vmem>>, vector<1x8x128xf32>
      %82 = vector.shape_cast %81 : vector<1x8x128xf32> to vector<8x128xf32>
      %c1_44 = arith.constant 1 : index
      %c0_45 = arith.constant 0 : index
      %c0_46 = arith.constant 0 : index
      %83 = vector.load %arg8[%c1_44, %c0_45, %c0_46] : memref<2x8x128xf32, #tpu.memory_space<vmem>>, vector<1x8x128xf32>
      %84 = vector.shape_cast %83 : vector<1x8x128xf32> to vector<8x128xf32>
      %85 = arith.truncf %82 : vector<8x128xf32> to vector<8x128xbf16>
      %86 = tpu.concatenate %78, %85 in 1 : vector<8x128xbf16>, vector<8x128xbf16> -> vector<8x256xbf16>
      %cst_47 = arith.constant dense<0.000000e+00> : vector<8x512xf32>
      %87 = tpu.matmul %86, %79, %cst_47 {dimension_numbers = #tpu.dot_dimension_numbers<[1], [0], [0], [1], [0, 0, 1, 1], [], []>} : vector<8x256xbf16>, vector<256x512xbf16>, vector<8x512xf32> -> vector<8x512xf32>
      %88 = vector.broadcast %80 : vector<1x512xf32> to vector<8x512xf32>
      %89 = arith.addf %87, %88 : vector<8x512xf32>
      %90 = vector.extract_strided_slice %89 {offsets = [0, 0], sizes = [8, 128], strides = [1, 1]} : vector<8x512xf32> to vector<8x128xf32>
      %91 = arith.negf %90 : vector<8x128xf32>
      %92 = math.exp %91 : vector<8x128xf32>
      %cst_48 = arith.constant 1.000000e+00 : f32
      %93 = vector.broadcast %cst_48 : f32 to vector<8x128xf32>
      %94 = arith.addf %93, %92 : vector<8x128xf32>
      %95 = arith.divf %93, %94 : vector<8x128xf32>
      %96 = vector.extract_strided_slice %89 {offsets = [0, 128], sizes = [8, 128], strides = [1, 1]} : vector<8x512xf32> to vector<8x128xf32>
      %97 = arith.negf %96 : vector<8x128xf32>
      %98 = math.exp %97 : vector<8x128xf32>
      %cst_49 = arith.constant 1.000000e+00 : f32
      %99 = vector.broadcast %cst_49 : f32 to vector<8x128xf32>
      %100 = arith.addf %99, %98 : vector<8x128xf32>
      %101 = arith.divf %99, %100 : vector<8x128xf32>
      %102 = vector.extract_strided_slice %89 {offsets = [0, 256], sizes = [8, 128], strides = [1, 1]} : vector<8x512xf32> to vector<8x128xf32>
      %103 = math.tanh %102 : vector<8x128xf32>
      %104 = vector.extract_strided_slice %89 {offsets = [0, 384], sizes = [8, 128], strides = [1, 1]} : vector<8x512xf32> to vector<8x128xf32>
      %105 = arith.negf %104 : vector<8x128xf32>
      %106 = math.exp %105 : vector<8x128xf32>
      %cst_50 = arith.constant 1.000000e+00 : f32
      %107 = vector.broadcast %cst_50 : f32 to vector<8x128xf32>
      %108 = arith.addf %107, %106 : vector<8x128xf32>
      %109 = arith.divf %107, %108 : vector<8x128xf32>
      %110 = arith.mulf %101, %84 : vector<8x128xf32>
      %111 = arith.mulf %95, %103 : vector<8x128xf32>
      %112 = arith.addf %110, %111 : vector<8x128xf32>
      %113 = math.tanh %112 : vector<8x128xf32>
      %114 = arith.mulf %109, %113 : vector<8x128xf32>
      %c1_51 = arith.constant 1 : index
      %c0_52 = arith.constant 0 : index
      %c0_53 = arith.constant 0 : index
      %115 = vector.load %arg12[%c1_51, %c0_52, %c0_53] : memref<2x8x128xf32, #tpu.memory_space<vmem>>, vector<1x8x128xf32>
      %116 = vector.shape_cast %115 : vector<1x8x128xf32> to vector<8x128xf32>
      %117 = vector.shape_cast %114 : vector<8x128xf32> to vector<1x8x128xf32>
      tpu.vector_store %arg12[%c1_51, %c0_52, %c0_53], %117 {strides = array<i32>} : memref<2x8x128xf32, #tpu.memory_space<vmem>>, vector<1x8x128xf32>,
      %c1_54 = arith.constant 1 : index
      %c0_55 = arith.constant 0 : index
      %c0_56 = arith.constant 0 : index
      %118 = vector.load %arg13[%c1_54, %c0_55, %c0_56] : memref<2x8x128xf32, #tpu.memory_space<vmem>>, vector<1x8x128xf32>
      %119 = vector.shape_cast %118 : vector<1x8x128xf32> to vector<8x128xf32>
      %120 = vector.shape_cast %112 : vector<8x128xf32> to vector<1x8x128xf32>
      tpu.vector_store %arg13[%c1_54, %c0_55, %c0_56], %120 {strides = array<i32>} : memref<2x8x128xf32, #tpu.memory_space<vmem>>, vector<1x8x128xf32>,
      %121 = arith.truncf %114 : vector<8x128xf32> to vector<8x128xbf16>
      %c0_57 = arith.constant 0 : index
      %c0_58 = arith.constant 0 : index
      %122 = vector.load %arg14[%c0_57, %c0_58] : memref<8x128xbf16, #tpu.memory_space<vmem>>, vector<8x128xbf16>
      tpu.vector_store %arg14[%c0_57, %c0_58], %121 {strides = array<i32>} : memref<8x128xbf16, #tpu.memory_space<vmem>>, vector<8x128xbf16>,
    } else {
    }
    %c0 = arith.constant 0 : index
    %c0_1 = arith.constant 0 : index
    %3 = vector.load %arg14[%c0, %c0_1] : memref<8x128xbf16, #tpu.memory_space<vmem>>, vector<8x128xbf16>
    %c0_2 = arith.constant 0 : index
    %c0_3 = arith.constant 0 : index
    %4 = vector.load %arg9[%c0_2, %c0_3] : memref<128x512xbf16, #tpu.memory_space<vmem>>, vector<128x512xbf16>
    %cst = arith.constant dense<0.000000e+00> : vector<8x512xf32>
    %5 = tpu.matmul %3, %4, %cst {dimension_numbers = #tpu.dot_dimension_numbers<[1], [0], [0], [1], [0, 0, 1, 1], [], []>} : vector<8x128xbf16>, vector<128x512xbf16>, vector<8x512xf32> -> vector<8x512xf32>
    %c0_4 = arith.constant 0 : index
    %c0_5 = arith.constant 0 : index
    %6 = vector.load %arg10[%c0_4, %c0_5] : memref<1x512xf32, #tpu.memory_space<vmem>>, vector<1x512xf32>
    %7 = vector.broadcast %6 : vector<1x512xf32> to vector<8x512xf32>
    %8 = arith.addf %5, %7 : vector<8x512xf32>
    %c0_6 = arith.constant 0 : index
    %c0_7 = arith.constant 0 : index
    %9 = vector.load %arg11[%c0_6, %c0_7] : memref<8x512xf32, #tpu.memory_space<vmem>>, vector<8x512xf32>
    tpu.vector_store %arg11[%c0_6, %c0_7], %8 {strides = array<i32>} : memref<8x512xf32, #tpu.memory_space<vmem>>, vector<8x512xf32>,
    return
  }
  func.func @transform_0(%arg0: i32, %arg1: memref<8xi32, #tpu.memory_space<smem>>) -> (i32, i32) {
    %c0_i32 = arith.constant 0 : i32
    %c0_i32_0 = arith.constant 0 : i32
    %c0_i32_1 = arith.constant 0 : i32
    return %c0_i32, %c0_i32_0 : i32, i32
  }
  func.func @transform_1(%arg0: i32, %arg1: memref<8xi32, #tpu.memory_space<smem>>) -> (i32, i32) {
    %c0_i32 = arith.constant 0 : i32
    %c0_i32_0 = arith.constant 0 : i32
    %c0_i32_1 = arith.constant 0 : i32
    return %c0_i32, %c0_i32_0 : i32, i32
  }
  func.func @transform_2(%arg0: i32, %arg1: memref<8xi32, #tpu.memory_space<smem>>) -> (i32, i32) {
    %c0_i32 = arith.constant 0 : i32
    %c0_i32_0 = arith.constant 0 : i32
    %c0_i32_1 = arith.constant 0 : i32
    return %c0_i32, %c0_i32_0 : i32, i32
  }
  func.func @transform_3(%arg0: i32, %arg1: memref<8xi32, #tpu.memory_space<smem>>) -> (i32, i32) {
    %c0_i32 = arith.constant 0 : i32
    %c0_i32_0 = arith.constant 0 : i32
    %c0_i32_1 = arith.constant 0 : i32
    return %c0_i32, %c0_i32_0 : i32, i32
  }
  func.func @transform_4(%arg0: i32, %arg1: memref<8xi32, #tpu.memory_space<smem>>) -> (i32, i32) {
    %c0_i32 = arith.constant 0 : i32
    %c0_i32_0 = arith.constant 0 : i32
    %c0_i32_1 = arith.constant 0 : i32
    return %c0_i32, %c0_i32_0 : i32, i32
  }
  func.func @transform_5(%arg0: i32, %arg1: memref<8xi32, #tpu.memory_space<smem>>) -> (i32, i32, i32) {
    %c0_i32 = arith.constant 0 : i32
    %c0_i32_0 = arith.constant 0 : i32
    %c0_i32_1 = arith.constant 0 : i32
    %c0_i32_2 = arith.constant 0 : i32
    return %c0_i32, %c0_i32_0, %c0_i32_1 : i32, i32, i32
  }
  func.func @transform_6(%arg0: i32, %arg1: memref<8xi32, #tpu.memory_space<smem>>) -> (i32, i32, i32) {
    %c0_i32 = arith.constant 0 : i32
    %c0_i32_0 = arith.constant 0 : i32
    %c0_i32_1 = arith.constant 0 : i32
    %c0_i32_2 = arith.constant 0 : i32
    return %c0_i32, %c0_i32_0, %c0_i32_1 : i32, i32, i32
  }
  func.func @transform_7(%arg0: i32, %arg1: memref<8xi32, #tpu.memory_space<smem>>) -> (i32, i32) {
    %c0_i32 = arith.constant 0 : i32
    %c0_i32_0 = arith.constant 0 : i32
    return %c0_i32, %arg0 : i32, i32
  }
  func.func @transform_8(%arg0: i32, %arg1: memref<8xi32, #tpu.memory_space<smem>>) -> (i32, i32) {
    %c0_i32 = arith.constant 0 : i32
    %c0_i32_0 = arith.constant 0 : i32
    return %c0_i32, %arg0 : i32, i32
  }
  func.func @transform_9(%arg0: i32, %arg1: memref<8xi32, #tpu.memory_space<smem>>) -> (i32, i32) {
    %c0_i32 = arith.constant 0 : i32
    %c0_i32_0 = arith.constant 0 : i32
    return %c0_i32, %arg0 : i32, i32
  }
  func.func @transform_10(%arg0: i32, %arg1: memref<8xi32, #tpu.memory_space<smem>>) -> (i32, i32, i32) {
    %c0_i32 = arith.constant 0 : i32
    %c0_i32_0 = arith.constant 0 : i32
    %c0_i32_1 = arith.constant 0 : i32
    %c0_i32_2 = arith.constant 0 : i32
    return %c0_i32, %c0_i32_0, %c0_i32_1 : i32, i32, i32
  }
  func.func @transform_11(%arg0: i32, %arg1: memref<8xi32, #tpu.memory_space<smem>>) -> (i32, i32, i32) {
    %c0_i32 = arith.constant 0 : i32
    %c0_i32_0 = arith.constant 0 : i32
    %c0_i32_1 = arith.constant 0 : i32
    %c0_i32_2 = arith.constant 0 : i32
    return %c0_i32, %c0_i32_0, %c0_i32_1 : i32, i32, i32
  }
}

</mosaic_0001>

<bundles_post_ra>
// kernel: tpu_custom_call.1
= control target key start
LH: loop header
LB: loop body
LE: loop exit
PB: predicated region body
PF: predicated region fallthrough
CT: control target
= control target key end

     0   :  { %s2250_s21 = smov [#allocation4]   ;;  %s2438_s0 = inlined_call_operand.hbm [shape: s32[8], index: 0, kind: input, shape index: {}]   ;;  %s2439_s1 = inlined_call_operand.hbm [shape: f32[512,128], index: 1, kind: input, shape index: {}]   ;;  %s2440_s2 = inlined_call_operand.hbm [shape: bf16[256,512], index: 2, kind: input, shape index: {}]   ;;  %s2441_s3 = inlined_call_operand.vmem [shape: f32[1,512], index: 3, kind: input, shape index: {}]   ;;  %s2442_s4 = inlined_call_operand.hbm [shape: bf16[256,512], index: 4, kind: input, shape index: {}]   ;;  %s2443_s5 = inlined_call_operand.vmem [shape: f32[1,512], index: 5, kind: input, shape index: {}]   ;;  %s2444_s6 = inlined_call_operand.hbm [shape: f32[2,8,128], index: 6, kind: input, shape index: {}]   ;;  %s2445_s7 = inlined_call_operand.hbm [shape: f32[2,8,128], index: 7, kind: input, shape index: {}]   ;;  %s2446_s8 = inlined_call_operand.hbm [shape: bf16[128,512], index: 8, kind: input, shape index: {}]   ;;  %s2447_s9 = inlined_call_operand.vmem [shape: f32[1,512], index: 9, kind: input, shape index: {}]   ;;  %s2448_s10 = inlined_call_operand.hbm [shape: f32[8,512], index: 10, kind: output, shape index: {0}]   ;;  %s2449_s11 = inlined_call_operand.hbm [shape: f32[2,8,128], index: 11, kind: output, shape index: {1}]   ;;  %s2450_s12 = inlined_call_operand.hbm [shape: f32[2,8,128], index: 12, kind: output, shape index: {2}]  }
   0x1   :  { %19 = dma.hbm_to_smem %s2438_s0, 16, %s2250_s21, [#allocation3] }
   0x2   :  { %2236 = dma.done.wait [#allocation3], 16 }
   0x3   :  { %2237 = vsyncadd [#allocation3], 4294967280 }
   0x4   :  { %21 = sfence }
   0x5   :  { %22 = vsyncpa [#allocation6], 0 }
   0x6   :  { %23 = vsyncpa [#allocation9], 0 }
   0x7   :  { %24 = vsyncpa [#allocation12], 0 }
   0x8   :  { %25 = vsyncpa [#allocation15], 0 }
   0x9   :  { %26 = vsyncpa [#allocation7], 0 }
   0xa   :  { %27 = vsyncpa [#allocation18], 0  ;;  %s2251_s24 = smov [#allocation8]  }
   0xb   :  { %s45_s25 = sshll.u32 %s2251_s24, 4  ;;  %s46_s25 = int_to_ptr.vmem [resolvable:$true] %s45_s25 }
   0xc   :  { %s2064_s26 = scalar_lea.vmem %s46_s25, 8192  ;;  %p2069_p1 = scmp.lt.s32.totalorder %s46_s25, %s46_s25 }
   0xd   :  { %p2065_p0 = scmp.ne.s32.totalorder %s46_s25, %s2064_s26  ;;  %p2070_p2 = scmp.lt.s32.totalorder %s2064_s26, %s2064_s26 }
   0xf   :  { %p2071_p3 = por %p2070_p2, %p2069_p1 }
  0x11   :  { %p2072_p4 = pnand %p2071_p3, %p2065_p0 }
  0x13   :  { %2075 = shalt.err (!%p2072_p4)
}
  0x14   :  { %s2252_s0 = smov 256   ;;  %s2253_s27 = smov 16  }
  0x15   :  { %51 = dma.hbm_to_vmem [thread:$0]  %s2440_s2, 8192, %s46_s25, [#allocation9], %s2252_s0, %s2252_s0, %s2253_s27  }
  0x16   :  { %s2254_s30 = smov [#allocation11]   ;;  %s2255_s14 = smov [#allocation5]  }
  0x17   :  { %s73_s13 = sshll.u32 %s2254_s30, 4  ;;  %s33_s15 = sshll.u32 %s2255_s14, 4  ;;  %s74_s13 = int_to_ptr.vmem [resolvable:$true] %s73_s13  ;;  %s34_s15 = int_to_ptr.vmem [resolvable:$true] %s33_s15 }
  0x18   :  { %s2084_s16 = scalar_lea.vmem %s74_s13, 256  ;;  %p2089_p6 = scmp.lt.s32.totalorder %s74_s13, %s74_s13 }
  0x19   :  { %p2085_p5 = scmp.ne.s32.totalorder %s74_s13, %s2084_s16  ;;  %p2090_p7 = scmp.lt.s32.totalorder %s2084_s16, %s2084_s16 }
  0x1b   :  { %p2091_p8 = por %p2090_p7, %p2089_p6 }
  0x1d   :  { %p2092_p9 = pnand %p2091_p8, %p2085_p5 }
  0x1f   :  { %2095 = shalt.err (!%p2092_p9)
}
  0x20   :  { %s2256_s17 = smov 128   ;;  %s2257_s18 = smov 8  }
  0x21   :  { %79 = dma.hbm_to_vmem [thread:$0]  %s2444_s6, 256, %s74_s13, [#allocation12], %s2256_s17, %s2256_s17, %s2257_s18  }
  0x22   :  { %s2104_s2 = scalar_lea.vmem %s34_s15, 8192  ;;  %p2109_p11 = scmp.lt.s32.totalorder %s34_s15, %s34_s15 }
  0x23   :  { %p2105_p10 = scmp.ne.s32.totalorder %s34_s15, %s2104_s2  ;;  %p2110_p12 = scmp.lt.s32.totalorder %s2104_s2, %s2104_s2 }
  0x25   :  { %p2111_p13 = por %p2110_p12, %p2109_p11 }
  0x27   :  { %p2112_p0 = pnand %p2111_p13, %p2105_p10 }
  0x29   :  { %2115 = shalt.err (!%p2112_p0)
}
  0x2a   :  { %39 = dma.hbm_to_vmem [thread:$0]  %s2439_s1, 8192, %s34_s15, [#allocation6], %s2256_s17, %s2256_s17, %s2257_s18  }
  0x2b   :  { %s2258_s23 = smov [#allocation10]   ;;  %s2259_s25 = smov [#allocation13]  }
  0x2c   :  { %s59_s24 = sshll.u32 %s2258_s23, 4  ;;  %s85_s6 = sshll.u32 %s2259_s25, 4  ;;  %s60_s24 = int_to_ptr.vmem [resolvable:$true] %s59_s24  ;;  %s86_s6 = int_to_ptr.vmem [resolvable:$true] %s85_s6 }
  0x2d   :  { %s2124_s26 = scalar_lea.vmem %s60_s24, 8192  ;;  %p2129_p2 = scmp.lt.s32.totalorder %s60_s24, %s60_s24 }
  0x2e   :  { %p2125_p1 = scmp.ne.s32.totalorder %s60_s24, %s2124_s26  ;;  %p2130_p3 = scmp.lt.s32.totalorder %s2124_s26, %s2124_s26 }
  0x30   :  { %p2131_p4 = por %p2130_p3, %p2129_p2 }
  0x32   :  { %p2132_p5 = pnand %p2131_p4, %p2125_p1 }
  0x34   :  { %2135 = shalt.err (!%p2132_p5)
}
  0x35   :  { %65 = dma.hbm_to_vmem [thread:$0]  %s2442_s4, 8192, %s60_s24, [#allocation9], %s2252_s0, %s2252_s0, %s2253_s27  }
  0x36   :  { %s2144_s1 = scalar_lea.vmem %s86_s6, 256  ;;  %p2149_p7 = scmp.lt.s32.totalorder %s86_s6, %s86_s6 }
  0x37   :  { %p2145_p6 = scmp.ne.s32.totalorder %s86_s6, %s2144_s1  ;;  %p2150_p8 = scmp.lt.s32.totalorder %s2144_s1, %s2144_s1 }
  0x39   :  { %p2151_p9 = por %p2150_p8, %p2149_p7 }
  0x3b   :  { %p2152_p10 = pnand %p2151_p9, %p2145_p6 }
  0x3d   :  { %2155 = shalt.err (!%p2152_p10)
}
  0x3e   :  { %91 = dma.hbm_to_vmem [thread:$0]  %s2445_s7, 256, %s86_s6, [#allocation12], %s2256_s17, %s2256_s17, %s2257_s18  }
  0x3f   :  { %s2260_s14 = smov [#allocation14]  }
  0x40   :  { %s97_s15 = sshll.u32 %s2260_s14, 4  ;;  %s98_s15 = int_to_ptr.vmem [resolvable:$true] %s97_s15 }
  0x41   :  { %s2164_s16 = scalar_lea.vmem %s98_s15, 4096  ;;  %p2169_p12 = scmp.lt.s32.totalorder %s98_s15, %s98_s15 }
  0x42   :  { %p2165_p11 = scmp.ne.s32.totalorder %s98_s15, %s2164_s16  ;;  %p2170_p13 = scmp.lt.s32.totalorder %s2164_s16, %s2164_s16 }
  0x44   :  { %p2171_p0 = por %p2170_p13, %p2169_p12 }
  0x46   :  { %p2172_p1 = pnand %p2171_p0, %p2165_p11 }
  0x48   :  { %2175 = shalt.err (!%p2172_p1)
}
  0x49   :  { %103 = dma.hbm_to_vmem [thread:$0]  %s2446_s8, 4096, %s98_s15, [#allocation15], %s2252_s0, %s2252_s0, %s2253_s27  }
  0x4a   :  { %2238 = dma.done.wait [#allocation6], 8192  }
  0x4b   :  { %2239 = vsyncadd [#allocation6], 4294959104 }
  0x4c   :  { %2240 = dma.done.wait [#allocation9], 16384  }
  0x4d   :  { %2241 = vsyncadd [#allocation9], 4294950912 }
  0x4e   :  { %2242 = dma.done.wait [#allocation12], 512  }
  0x4f   :  { %2243 = vsyncadd [#allocation12], 4294966784 }
  0x50   :  { %2244 = dma.done.wait [#allocation15], 4096  }
  0x51   :  { %2245 = vsyncadd [#allocation15], 4294963200  ;;  %v1776_v0 = vld [vmem:[#allocation8 + $0xe4] ss:$16 sps:$4 sm:$0xff]   ;;  %v1778_v1 = vld [vmem:[#allocation8 + $0xe0] ss:$16 sps:$4 sm:$0xff]  }
  0x52   :  { %598 = vmatprep.subr.bf16.mxu0 %v1776_v0  ;;  %v1779_v2 = vld [vmem:[#allocation8 + $0xc4] ss:$16 sps:$4 sm:$0xff]   ;;  %v1781_v3 = vld [vmem:[#allocation8 + $0xc0] ss:$16 sps:$4 sm:$0xff]   ;;  %v1787_v5 = vld [vmem:[#allocation8 + $0xec] ss:$16 sps:$4 sm:$0xff]  }
  0x53   :  { %599 = vmatpush1.bf16.msra.mxu0 %v1778_v1  ;;  %v1782_v4 = vld [vmem:[#allocation8 + $0xa4] ss:$16 sps:$4 sm:$0xff]   ;;  %v1790_v6 = vld [vmem:[#allocation8 + $0xe8] ss:$16 sps:$4 sm:$0xff]   ;;  %v1784_v7 = vld [vmem:[#allocation8 + $0xa0] ss:$16 sps:$4 sm:$0xff]   ;;  %639 = vmatprep.subr.bf16.mxu1 %v1787_v5 }
  0x54   :  { %600 = vmatprep.subr.bf16.mxu0 %v1779_v2  ;;  %v1785_v8 = vld [vmem:[#allocation8 + $0x84] ss:$16 sps:$4 sm:$0xff]   ;;  %640 = vmatpush1.bf16.msra.mxu1 %v1790_v6  ;;  %v1793_v9 = vld [vmem:[#allocation8 + $0xcc] ss:$16 sps:$4 sm:$0xff]   ;;  %v1796_v10 = vld [vmem:[#allocation8 + $0xc8] ss:$16 sps:$4 sm:$0xff]  }
  0x55   :  { %641 = vmatprep.subr.bf16.mxu1 %v1793_v9  ;;  %v1789_v11 = vld [vmem:[#allocation8 + $0x80] ss:$16 sps:$4 sm:$0xff]   ;;  %v1791_v12 = vld [vmem:[#allocation8 + $0x64] ss:$16 sps:$4 sm:$0xff]   ;;  %v1799_v13 = vld [vmem:[#allocation8 + $0xac] ss:$16 sps:$4 sm:$0xff]  }
  0x56   :  { %v1802_v14 = vld [vmem:[#allocation8 + $0xa8] ss:$16 sps:$4 sm:$0xff]   ;;  %v1805_v15 = vld [vmem:[#allocation8 + $0x8c] ss:$16 sps:$4 sm:$0xff]   ;;  %v1795_v16 = vld [vmem:[#allocation8 + $0x60] ss:$16 sps:$4 sm:$0xff]  }
  0x57   :  { %601 = vmatpush1.bf16.msra.mxu0 %v1781_v3  ;;  %v1797_v17 = vld [vmem:[#allocation8 + $0x44] ss:$16 sps:$4 sm:$0xff]   ;;  %v1808_v18 = vld [vmem:[#allocation8 + $0x88] ss:$16 sps:$4 sm:$0xff]   ;;  %v1811_v19 = vld [vmem:[#allocation8 + $0x6c] ss:$16 sps:$4 sm:$0xff]  }
  0x58   :  { %602 = vmatprep.subr.bf16.mxu0 %v1782_v4  ;;  %642 = vmatpush1.bf16.msra.mxu1 %v1796_v10  ;;  %v1801_v20 = vld [vmem:[#allocation8 + $0x40] ss:$16 sps:$4 sm:$0xff]   ;;  %v1803_v21 = vld [vmem:[#allocation8 + $0x24] ss:$16 sps:$4 sm:$0xff]   ;;  %v1814_v22 = vld [vmem:[#allocation8 + $0x68] ss:$16 sps:$4 sm:$0xff]  }
  0x59   :  { %643 = vmatprep.subr.bf16.mxu1 %v1799_v13  ;;  %v1817_v23 = vld [vmem:[#allocation8 + $0x4c] ss:$16 sps:$4 sm:$0xff]   ;;  %v1807_v24 = vld [vmem:[#allocation8 + $0x20] ss:$16 sps:$4 sm:$0xff]   ;;  %v1809_v25 = vld [vmem:[#allocation8 + $0x4] ss:$16 sps:$4 sm:$0xff]  }
  0x5a   :  { %v1820_v26 = vld [vmem:[#allocation8 + $0x48] ss:$16 sps:$4 sm:$0xff]   ;;  %v1823_v27 = vld [vmem:[#allocation8 + $0x2c] ss:$16 sps:$4 sm:$0xff]   ;;  %s2369_s7 = sld [smem:[#allocation4]]  ;;  %vm174_vm0 = vcmask 1040384  }
  0x5b   :  { %603 = vmatpush1.bf16.msra.mxu0 %v1784_v7  ;;  %s2371_s8 = sld [smem:[#allocation4 + $0x1]]  ;;  %v1813_v28 = vld [vmem:[#allocation8] ss:$16 sps:$4 sm:$0xff]   ;;  %v1815_v29 = vld [vmem:[#allocation8 + $0x1e4] ss:$16 sps:$4 sm:$0xff]   ;;  %vm176_vm1 = vcmask 1041408  }
  0x5c   :  { %604 = vmatprep.subr.bf16.mxu0 %v1785_v8  ;;  %644 = vmatpush1.bf16.msra.mxu1 %v1802_v14  ;;  %s2373_s0 = sld [smem:[#allocation4 + $0x2]]  ;;  %v1826_v30 = vld [vmem:[#allocation8 + $0x28] ss:$16 sps:$4 sm:$0xff]   ;;  %v1829_v31 = vld [vmem:[#allocation8 + $0xc] ss:$16 sps:$4 sm:$0xff]   ;;  %v254_v41 = vld [vmem:[#allocation11] sm:$0xff] }
  0x5d   :  { %645 = vmatprep.subr.bf16.mxu1 %v1805_v15  ;;  %s2375_s27 = sld [smem:[#allocation4 + $0x3]]  ;;  %v1819_v32 = vld [vmem:[#allocation8 + $0x1e0] ss:$16 sps:$4 sm:$0xff]   ;;  %v1821_v33 = vld [vmem:[#allocation8 + $0x1c4] ss:$16 sps:$4 sm:$0xff]   ;;  %v256_v43 = vpack.c.bf16 %v254_v41, %v254_v41  ;;  %vm178_vm2 = vcmask 1042432  }
  0x5e   :  { %s2377_s20 = sld [smem:[#allocation4 + $0x4]]  ;;  %v1832_v34 = vld [vmem:[#allocation8 + $0x8] ss:$16 sps:$4 sm:$0xff]   ;;  %v1835_v35 = vld [vmem:[#allocation8 + $0x1ec] ss:$16 sps:$4 sm:$0xff]   ;;  %vm180_vm3 = vcmask 1043456  }
  0x5f   :  { %605 = vmatpush1.bf16.msra.mxu0 %v1789_v11  ;;  %s2379_s2 = sld [smem:[#allocation4 + $0x5]]  ;;  %v1825_v36 = vld [vmem:[#allocation8 + $0x1c0] ss:$16 sps:$4 sm:$0xff]   ;;  %v1827_v37 = vld [vmem:[#allocation8 + $0x1a4] ss:$16 sps:$4 sm:$0xff]   ;;  %630 = vmatprep.mubr.bf16.mxu0 %v256_v43  ;;  %vm182_vm4 = vcmask 1044480  }
  0x60   :  { %606 = vmatprep.subr.bf16.mxu0 %v1791_v12  ;;  %646 = vmatpush1.bf16.msra.mxu1 %v1808_v18  ;;  %v1838_v38 = vld [vmem:[#allocation8 + $0x1e8] ss:$16 sps:$4 sm:$0xff]   ;;  %v1841_v39 = vld [vmem:[#allocation8 + $0x1cc] ss:$16 sps:$4 sm:$0xff]   ;;  %s2381_s21 = sld [smem:[#allocation4 + $0x6]]  ;;  %s130_s25 = scalar_lea.vmem [#allocation5], %s2369_s7 }
  0x61   :  { %647 = vmatprep.subr.bf16.mxu1 %v1811_v19  ;;  %v1831_v40 = vld [vmem:[#allocation8 + $0x1a0] ss:$16 sps:$4 sm:$0xff]   ;;  %s2383_s22 = sld [smem:[#allocation4 + $0x7]]  ;;  %v1833_v42 = vld [vmem:[#allocation8 + $0x184] ss:$16 sps:$4 sm:$0xff]   ;;  %s133_s23 = scalar_lea.vmem [#allocation5], %s2371_s8  ;;  %671 = vmatprep.mubr.bf16.mxu1 %v256_v43 }
  0x62   :  { %v134_v44 = vld [vmem:[%s133_s23] sm:$0x1]  ;;  %s136_s24 = scalar_lea.vmem [#allocation5], %s2373_s0  ;;  %v1844_v46 = vld [vmem:[#allocation8 + $0x1c8] ss:$16 sps:$4 sm:$0xff]   ;;  %vm184_vm5 = vcmask 1045504  }
  0x63   :  { %607 = vmatpush1.bf16.msra.mxu0 %v1795_v16  ;;  %v137_v45 = vld [vmem:[%s136_s24] sm:$0x1]  ;;  %s139_s6 = scalar_lea.vmem [#allocation5], %s2375_s27  ;;  %v154_v50 = vrot.slane %v134_v44, 7  ;;  %v1837_v52 = vld [vmem:[#allocation8 + $0x180] ss:$16 sps:$4 sm:$0xff]  }
  0x64   :  { %608 = vmatprep.subr.bf16.mxu0 %v1797_v17  ;;  %648 = vmatpush1.bf16.msra.mxu1 %v1814_v22  ;;  %v131_v47 = vld [vmem:[%s130_s25] sm:$0x1]  ;;  %v157_v51 = vrot.slane %v137_v45, 6  ;;  %s142_s26 = scalar_lea.vmem [#allocation5], %s2377_s20  ;;  %v1839_v56 = vld [vmem:[#allocation8 + $0x164] ss:$16 sps:$4 sm:$0xff]  }
  0x65   :  { %649 = vmatprep.subr.bf16.mxu1 %v1817_v23  ;;  %v140_v48 = vld [vmem:[%s139_s6] sm:$0x1]  ;;  %v175_v55 = vsel %vm174_vm0, %v131_v47, %v154_v50  ;;  %v1850_v57 = vld [vmem:[#allocation8 + $0x1a8] ss:$16 sps:$4 sm:$0xff]   ;;  %s145_s28 = scalar_lea.vmem [#allocation5], %s2379_s2  ;;  %vm186_vm6 = vcmask 1046528  }
  0x66   :  { %v1847_v49 = vld [vmem:[#allocation8 + $0x1ac] ss:$16 sps:$4 sm:$0xff]   ;;  %v160_v54 = vrot.slane %v140_v48, 5  ;;  %v177_v58 = vsel %vm176_vm1, %v175_v55, %v157_v51  ;;  %v1843_v62 = vld [vmem:[#allocation8 + $0x160] ss:$16 sps:$4 sm:$0xff]   ;;  %s148_s29 = scalar_lea.vmem [#allocation5], %s2381_s21 }
  0x67   :  { %609 = vmatpush1.bf16.msra.mxu0 %v1801_v20  ;;  %v143_v53 = vld [vmem:[%s142_s26] sm:$0x1]  ;;  %v1845_v63 = vld [vmem:[#allocation8 + $0x144] ss:$16 sps:$4 sm:$0xff]   ;;  %v1856_v1 = vld [vmem:[#allocation8 + $0x188] ss:$16 sps:$4 sm:$0xff]  }
  0x68   :  { %610 = vmatprep.subr.bf16.mxu0 %v1803_v21  ;;  %650 = vmatpush1.bf16.msra.mxu1 %v1820_v26  ;;  %v1853_v59 = vld [vmem:[#allocation8 + $0x18c] ss:$16 sps:$4 sm:$0xff]   ;;  %v163_v61 = vrot.slane %v143_v53, 4  ;;  %v179_v0 = vsel %vm178_vm2, %v177_v58, %v160_v54  ;;  %v1849_v3 = vld [vmem:[#allocation8 + $0x140] ss:$16 sps:$4 sm:$0xff]   ;;  %s151_s1 = scalar_lea.vmem [#allocation5], %s2383_s22 }
  0x69   :  { %651 = vmatprep.subr.bf16.mxu1 %v1823_v27  ;;  %v146_v60 = vld [vmem:[%s145_s28] sm:$0x1]  ;;  %v1851_v6 = vld [vmem:[#allocation8 + $0x124] ss:$16 sps:$4 sm:$0xff]   ;;  %v1862_v8 = vld [vmem:[#allocation8 + $0x168] ss:$16 sps:$4 sm:$0xff]  }
  0x6a   :  { %v1859_v2 = vld [vmem:[#allocation8 + $0x16c] ss:$16 sps:$4 sm:$0xff]   ;;  %v166_v5 = vrot.slane %v146_v60, 3  ;;  %v181_v7 = vsel %vm180_vm3, %v179_v0, %v163_v61  ;;  %v1855_v12 = vld [vmem:[#allocation8 + $0x120] ss:$16 sps:$4 sm:$0xff]  }
  0x6b   :  { %611 = vmatpush1.bf16.msra.mxu0 %v1807_v24  ;;  %v149_v4 = vld [vmem:[%s148_s29] sm:$0x1]  ;;  %v1857_v14 = vld [vmem:[#allocation8 + $0x104] ss:$16 sps:$4 sm:$0xff]   ;;  %v1865_v15 = vld [vmem:[#allocation8 + $0x148] ss:$16 sps:$4 sm:$0xff]  }
  0x6c   :  { %612 = vmatprep.subr.bf16.mxu0 %v1809_v25  ;;  %652 = vmatpush1.bf16.msra.mxu1 %v1826_v30  ;;  %v152_v9 = vld [vmem:[%s151_s1] sm:$0x1]  ;;  %v169_v11 = vrot.slane %v149_v4, 2  ;;  %v183_v13 = vsel %vm182_vm4, %v181_v7, %v166_v5  ;;  %v1861_v19 = vld [vmem:[#allocation8 + $0x100] ss:$16 sps:$4 sm:$0xff]  }
  0x6d   :  { %653 = vmatprep.subr.bf16.mxu1 %v1829_v31  ;;  %v1863_v10 = vld [vmem:[#allocation8 + $0x14c] ss:$16 sps:$4 sm:$0xff]   ;;  %v172_v16 = vrot.slane %v152_v9, 1  ;;  %v1868_v20 = vld [vmem:[#allocation8 + $0x128] ss:$16 sps:$4 sm:$0xff]  }
  0x6e   :  { %v1866_v17 = vld [vmem:[#allocation8 + $0x12c] ss:$16 sps:$4 sm:$0xff]   ;;  %v185_v18 = vsel %vm184_vm5, %v183_v13, %v169_v11  ;;  %v1874_v21 = vld [vmem:[#allocation10 + $0xe4] ss:$16 sps:$4 sm:$0xff]   ;;  %v1872_v24 = vld [vmem:[#allocation10 + $0xe0] ss:$16 sps:$4 sm:$0xff]  }
  0x6f   :  { %613 = vmatpush1.bf16.msra.mxu0 %v1813_v28  ;;  %v187_v22 = vsel %vm186_vm6, %v185_v18, %v172_v16  ;;  %v1869_v23 = vld [vmem:[#allocation8 + $0x10c] ss:$16 sps:$4 sm:$0xff]   ;;  %v1871_v26 = vld [vmem:[#allocation8 + $0x108] ss:$16 sps:$4 sm:$0xff]   ;;  %v1880_v27 = vld [vmem:[#allocation10 + $0xc4] ss:$16 sps:$4 sm:$0xff]  }
  0x70   :  { %614 = vmatprep.subr.bf16.mxu0 %v1815_v29  ;;  %654 = vmatpush1.bf16.msra.mxu1 %v1832_v34  ;;  %v188_v25 = vpack.c.bf16 %v187_v22, %v187_v22  ;;  %v1877_v28 = vld [vmem:[#allocation10 + $0xec] ss:$16 sps:$4 sm:$0xff]   ;;  %v1878_v29 = vld [vmem:[#allocation10 + $0xc0] ss:$16 sps:$4 sm:$0xff]   ;;  %v1875_v30 = vld [vmem:[#allocation10 + $0xe8] ss:$16 sps:$4 sm:$0xff]  }
  0x71   :  { %655 = vmatprep.subr.bf16.mxu1 %v1835_v35  ;;  %v1883_v31 = vld [vmem:[#allocation10 + $0xcc] ss:$16 sps:$4 sm:$0xff]   ;;  %v1884_v35 = vld [vmem:[#allocation10 + $0xa0] ss:$16 sps:$4 sm:$0xff]   ;;  %v1898_v41 = vld [vmem:[#allocation10 + $0x64] ss:$16 sps:$4 sm:$0xff]  }
  0x72   :  { %v1889_v34 = vld [vmem:[#allocation10 + $0xac] ss:$16 sps:$4 sm:$0xff]   ;;  %v1896_v43 = vld [vmem:[#allocation10 + $0x60] ss:$16 sps:$4 sm:$0xff]   ;;  %v1899_v44 = vld [vmem:[#allocation10 + $0x68] ss:$16 sps:$4 sm:$0xff]  }
  0x73   :  { %615 = vmatpush2.bf16.msra.mxu0 %v1819_v32  ;;  %v1881_v32 = vld [vmem:[#allocation10 + $0xc8] ss:$16 sps:$4 sm:$0xff]   ;;  %v1904_v45 = vld [vmem:[#allocation10 + $0x44] ss:$16 sps:$4 sm:$0xff]   ;;  %v1902_v47 = vld [vmem:[#allocation10 + $0x40] ss:$16 sps:$4 sm:$0xff]  }
  0x74   :  { %616 = vmatprep.subr.bf16.mxu0 %v1821_v33  ;;  %656 = vmatpush2.bf16.msra.mxu1 %v1838_v38  ;;  %v1886_v33 = vld [vmem:[#allocation10 + $0xa4] ss:$16 sps:$4 sm:$0xff]   ;;  %v1895_v38 = vld [vmem:[#allocation10 + $0x8c] ss:$16 sps:$4 sm:$0xff]   ;;  %v1905_v48 = vld [vmem:[#allocation10 + $0x48] ss:$16 sps:$4 sm:$0xff]  }
  0x75   :  { %657 = vmatprep.subr.bf16.mxu1 %v1841_v39  ;;  %v1890_v39 = vld [vmem:[#allocation10 + $0x80] ss:$16 sps:$4 sm:$0xff]   ;;  %v1913_v50 = vld [vmem:[#allocation10 + $0x2c] ss:$16 sps:$4 sm:$0xff]   ;;  %v1916_v53 = vld [vmem:[#allocation10 + $0x4] ss:$16 sps:$4 sm:$0xff]  }
  0x76   :  { %v1908_v51 = vld [vmem:[#allocation10 + $0x20] ss:$16 sps:$4 sm:$0xff]   ;;  %v1919_v54 = vld [vmem:[#allocation10 + $0xc] ss:$16 sps:$4 sm:$0xff]   ;;  %v1923_v60 = vld [vmem:[#allocation10 + $0x1e8] ss:$16 sps:$4 sm:$0xff]  }
  0x77   :  { %617 = vmatpush2.bf16.msra.mxu0 %v1825_v36  ;;  %v1887_v36 = vld [vmem:[#allocation10 + $0xa8] ss:$16 sps:$4 sm:$0xff]   ;;  %v1914_v55 = vld [vmem:[#allocation10] ss:$16 sps:$4 sm:$0xff]   ;;  %v1925_v58 = vld [vmem:[#allocation10 + $0x1ec] ss:$16 sps:$4 sm:$0xff]  }
  0x78   :  { %618 = vmatprep.subr.bf16.mxu0 %v1827_v37  ;;  %658 = vmatpush2.bf16.msra.mxu1 %v1844_v46  ;;  %v1892_v37 = vld [vmem:[#allocation10 + $0x84] ss:$16 sps:$4 sm:$0xff]   ;;  %v1907_v46 = vld [vmem:[#allocation10 + $0x4c] ss:$16 sps:$4 sm:$0xff]   ;;  %v1929_v0 = vld [vmem:[#allocation10 + $0x1c8] ss:$16 sps:$4 sm:$0xff]  }
  0x79   :  { %659 = vmatprep.subr.bf16.mxu1 %v1847_v49  ;;  %v1910_v49 = vld [vmem:[#allocation10 + $0x24] ss:$16 sps:$4 sm:$0xff]   ;;  %v1935_v4 = vld [vmem:[#allocation10 + $0x1a8] ss:$16 sps:$4 sm:$0xff]   ;;  %v1938_v7 = vld [vmem:[#allocation10 + $0x180] ss:$16 sps:$4 sm:$0xff]  }
  0x7a   :  { %v1928_v61 = vld [vmem:[#allocation10 + $0x1c4] ss:$16 sps:$4 sm:$0xff]   ;;  %v1944_v9 = vld [vmem:[#allocation10 + $0x160] ss:$16 sps:$4 sm:$0xff]   ;;  %v1947_v11 = vld [vmem:[#allocation10 + $0x168] ss:$16 sps:$4 sm:$0xff]  }
  0x7b   :  { %619 = vmatpush2.bf16.msra.mxu0 %v1831_v40  ;;  %v1893_v40 = vld [vmem:[#allocation10 + $0x88] ss:$16 sps:$4 sm:$0xff]   ;;  %v1940_v5 = vld [vmem:[#allocation10 + $0x184] ss:$16 sps:$4 sm:$0xff]   ;;  %v1961_v18 = vld [vmem:[#allocation10 + $0x12c] ss:$16 sps:$4 sm:$0xff]  }
  0x7c   :  { %620 = vmatprep.subr.bf16.mxu0 %v1833_v42  ;;  %660 = vmatpush2.bf16.msra.mxu1 %v1850_v57  ;;  %v1901_v42 = vld [vmem:[#allocation10 + $0x6c] ss:$16 sps:$4 sm:$0xff]   ;;  %v1922_v57 = vld [vmem:[#allocation10 + $0x1e4] ss:$16 sps:$4 sm:$0xff]   ;;  %v1953_v16 = vld [vmem:[#allocation10 + $0x148] ss:$16 sps:$4 sm:$0xff]  }
  0x7d   :  { %661 = vmatprep.subr.bf16.mxu1 %v1853_v59  ;;  %v1920_v59 = vld [vmem:[#allocation10 + $0x1e0] ss:$16 sps:$4 sm:$0xff]   ;;  %v1952_v13 = vld [vmem:[#allocation10 + $0x144] ss:$16 sps:$4 sm:$0xff]   ;;  %v1959_v22 = vld [vmem:[#allocation10 + $0x128] ss:$16 sps:$4 sm:$0xff]  }
  0x7f   :  { %621 = vmatpush2.bf16.msra.mxu0 %v1837_v52  ;;  %v1911_v52 = vld [vmem:[#allocation10 + $0x28] ss:$16 sps:$4 sm:$0xff]  }
  0x80   :  { %622 = vmatprep.subr.bf16.mxu0 %v1839_v56  ;;  %662 = vmatpush2.bf16.msra.mxu1 %v1856_v1  ;;  %v1917_v56 = vld [vmem:[#allocation10 + $0x8] ss:$16 sps:$4 sm:$0xff]   ;;  %v1934_v1 = vld [vmem:[#allocation10 + $0x1a4] ss:$16 sps:$4 sm:$0xff]  }
  0x81   :  { %663 = vmatprep.subr.bf16.mxu1 %v1859_v2  ;;  %v1937_v2 = vld [vmem:[#allocation10 + $0x1ac] ss:$16 sps:$4 sm:$0xff]  }
  0x83   :  { %623 = vmatpush2.bf16.msra.mxu0 %v1843_v62  ;;  %v1931_v62 = vld [vmem:[#allocation10 + $0x1cc] ss:$16 sps:$4 sm:$0xff]  }
  0x84   :  { %624 = vmatprep.subr.bf16.mxu0 %v1845_v63  ;;  %664 = vmatpush2.bf16.msra.mxu1 %v1862_v8  ;;  %v1926_v63 = vld [vmem:[#allocation10 + $0x1c0] ss:$16 sps:$4 sm:$0xff]   ;;  %v1941_v8 = vld [vmem:[#allocation10 + $0x188] ss:$16 sps:$4 sm:$0xff]  }
  0x85   :  { %665 = vmatprep.subr.bf16.mxu1 %v1863_v10  ;;  %v1946_v10 = vld [vmem:[#allocation10 + $0x164] ss:$16 sps:$4 sm:$0xff]  }
  0x87   :  { %625 = vmatpush2.bf16.msra.mxu0 %v1849_v3  ;;  %v1932_v3 = vld [vmem:[#allocation10 + $0x1a0] ss:$16 sps:$4 sm:$0xff]  }
  0x88   :  { %626 = vmatprep.subr.bf16.mxu0 %v1851_v6  ;;  %666 = vmatpush2.bf16.msra.mxu1 %v1865_v15  ;;  %v1943_v6 = vld [vmem:[#allocation10 + $0x18c] ss:$16 sps:$4 sm:$0xff]   ;;  %v1950_v15 = vld [vmem:[#allocation10 + $0x140] ss:$16 sps:$4 sm:$0xff]  }
  0x89   :  { %667 = vmatprep.subr.bf16.mxu1 %v1866_v17  ;;  %v1958_v17 = vld [vmem:[#allocation10 + $0x124] ss:$16 sps:$4 sm:$0xff]  }
  0x8b   :  { %627 = vmatpush2.bf16.msra.mxu0 %v1855_v12  ;;  %v1949_v12 = vld [vmem:[#allocation10 + $0x16c] ss:$16 sps:$4 sm:$0xff]  }
  0x8c   :  { %628 = vmatprep.subr.bf16.mxu0 %v1857_v14  ;;  %668 = vmatpush2.bf16.msra.mxu1 %v1868_v20  ;;  %v1955_v14 = vld [vmem:[#allocation10 + $0x14c] ss:$16 sps:$4 sm:$0xff]  }
  0x8d   :  { %669 = vmatprep.subr.bf16.mxu1 %v1869_v23  ;;  %v1964_v23 = vld [vmem:[#allocation10 + $0x104] ss:$16 sps:$4 sm:$0xff]  }
  0x8f   :  { %629 = vmatpush2.bf16.msra.mxu0 %v1861_v19  ;;  %v773_v19 = vld [vmem:[#allocation11 + $0x8] sm:$0xff] }
  0x90   :  { %1118 = vmatprep.subr.bf16.mxu0 %v1874_v21  ;;  %670 = vmatpush2.bf16.msra.mxu1 %v1871_v26  ;;  %v776_v20 = vpack.c.bf16 %v773_v19, %v773_v19  ;;  %v1956_v21 = vld [vmem:[#allocation10 + $0x120] ss:$16 sps:$4 sm:$0xff]   ;;  %v1965_v26 = vld [vmem:[#allocation10 + $0x108] ss:$16 sps:$4 sm:$0xff]   ;;  %v1991_v19 = vld [vmem:[#allocation14 + $0x8c] ss:$16 sps:$4 sm:$0xff]  }
  0x91   :  { %1159 = vmatprep.subr.bf16.mxu1 %v1877_v28 }
  0x92   :  { %631 = vmatmul.mubr.bf16.vlgmr.msra.gmra.mxu0 %v188_v25 }
  0x93   :  { %1119 = vmatpush1.bf16.msra.mxu0 %v1872_v24  ;;  %672 = vmatmul.mubr.bf16.vlgmr.msra.gmra.mxu1 %v188_v25  ;;  %v1967_v24 = vld [vmem:[#allocation10 + $0x10c] ss:$16 sps:$4 sm:$0xff]   ;;  %v1962_v25 = vld [vmem:[#allocation10 + $0x100] ss:$16 sps:$4 sm:$0xff]  }
  0x94   :  { %1120 = vmatprep.subr.bf16.mxu0 %v1880_v27  ;;  %1160 = vmatpush1.bf16.msra.mxu1 %v1875_v30  ;;  %v258_v27 = vlaneseq  ;;  %v253_v30 = vld [vmem:[%s2441_s3] sm:$0xf] }
  0x95   :  { %1161 = vmatprep.subr.bf16.mxu1 %v1883_v31  ;;  %1150 = vmatprep.mubr.bf16.mxu0 %v776_v20 }
  0x96   :  { %1191 = vmatprep.mubr.bf16.mxu1 %v776_v20  ;;  %v259_v28 = vshrl.u32 %v258_v27, 7  ;;  %v1986_v20 = vld [vmem:[#allocation14 + $0x80] ss:$16 sps:$4 sm:$0xff]   ;;  %v2003_v27 = vld [vmem:[#allocation14 + $0x4c] ss:$16 sps:$4 sm:$0xff]  }
  0x97   :  { %1121 = vmatpush1.bf16.msra.mxu0 %v1878_v29 }
  0x98   :  { %1162 = vmatpush1.bf16.msra.mxu1 %v1881_v32  ;;  %1122 = vmatprep.subr.bf16.mxu0 %v1886_v33  ;;  %v2394_v29 = vsub.s32 0, %v259_v28  ;;  %v2399_v31 = vsub.s32 1, %v259_v28 }
  0x99   :  { %1163 = vmatprep.subr.bf16.mxu1 %v1889_v34 }
  0x9a   :  { %v261_v32 = vrot.slane %v253_v30, %v2394_v29  ;;  %v265_v33 = vrot.slane %v253_v30, %v2399_v31 }
  0x9b   :  { %1123 = vmatpush1.bf16.msra.mxu0 %v1884_v35 }
  0x9c   :  { %1164 = vmatpush1.bf16.msra.mxu1 %v1887_v36  ;;  %1124 = vmatprep.subr.bf16.mxu0 %v1892_v37 }
  0x9d   :  { %1165 = vmatprep.subr.bf16.mxu1 %v1895_v38 }
  0x9f   :  { %1125 = vmatpush1.bf16.msra.mxu0 %v1890_v39 }
  0xa0   :  { %1166 = vmatpush1.bf16.msra.mxu1 %v1893_v40  ;;  %1126 = vmatprep.subr.bf16.mxu0 %v1898_v41  ;;  %v2403_v40 = vsub.s32 3, %v259_v28 }
  0xa1   :  { %1167 = vmatprep.subr.bf16.mxu1 %v1901_v42 }
  0xa3   :  { %1127 = vmatpush1.bf16.msra.mxu0 %v1896_v43 }
  0xa4   :  { %1168 = vmatpush1.bf16.msra.mxu1 %v1899_v44  ;;  %1128 = vmatprep.subr.bf16.mxu0 %v1904_v45  ;;  %v2405_v44 = vsub.s32 2, %v259_v28  ;;  %v1998_v28 = vld [vmem:[#allocation14 + $0x40] ss:$16 sps:$4 sm:$0xff]  }
  0xa5   :  { %1169 = vmatprep.subr.bf16.mxu1 %v1907_v46  ;;  %v273_v46 = vrot.slane %v253_v30, %v2403_v40 }
  0xa7   :  { %1129 = vmatpush1.bf16.msra.mxu0 %v1902_v47 }
  0xa8   :  { %1170 = vmatpush1.bf16.msra.mxu1 %v1905_v48  ;;  %1130 = vmatprep.subr.bf16.mxu0 %v1910_v49  ;;  %v269_v48 = vrot.slane %v253_v30, %v2405_v44  ;;  %v2001_v30 = vld [vmem:[#allocation14 + $0x48] ss:$16 sps:$4 sm:$0xff]  }
  0xa9   :  { %1171 = vmatprep.subr.bf16.mxu1 %v1913_v50 }
  0xab   :  { %1131 = vmatpush1.bf16.msra.mxu0 %v1908_v51 }
  0xac   :  { %1172 = vmatpush1.bf16.msra.mxu1 %v1911_v52  ;;  %1132 = vmatprep.subr.bf16.mxu0 %v1916_v53 }
  0xad   :  { %1173 = vmatprep.subr.bf16.mxu1 %v1919_v54 }
  0xaf   :  { %1133 = vmatpush1.bf16.msra.mxu0 %v1914_v55 }
  0xb0   :  { %1174 = vmatpush1.bf16.msra.mxu1 %v1917_v56  ;;  %1134 = vmatprep.subr.bf16.mxu0 %v1922_v57 }
  0xb1   :  { %1175 = vmatprep.subr.bf16.mxu1 %v1925_v58 }
  0xb3   :  { %1135 = vmatpush2.bf16.msra.mxu0 %v1920_v59 }
  0xb4   :  { %1176 = vmatpush2.bf16.msra.mxu1 %v1923_v60  ;;  %1136 = vmatprep.subr.bf16.mxu0 %v1928_v61  ;;  %v255_v60 = vld [vmem:[#allocation13] sm:$0xff] }
  0xb5   :  { %1177 = vmatprep.subr.bf16.mxu1 %v1931_v62 }
  0xb7   :  { %1137 = vmatpush2.bf16.msra.mxu0 %v1926_v63 }
  0xb8   :  { %1178 = vmatpush2.bf16.msra.mxu1 %v1929_v0  ;;  %1138 = vmatprep.subr.bf16.mxu0 %v1934_v1 }
  0xb9   :  { %1179 = vmatprep.subr.bf16.mxu1 %v1937_v2 }
  0xbb   :  { %1139 = vmatpush2.bf16.msra.mxu0 %v1932_v3 }
  0xbc   :  { %1180 = vmatpush2.bf16.msra.mxu1 %v1935_v4  ;;  %1140 = vmatprep.subr.bf16.mxu0 %v1940_v5 }
  0xbd   :  { %1181 = vmatprep.subr.bf16.mxu1 %v1943_v6  ;;  %v1970_v6 = vld [vmem:[#allocation14 + $0xe4] ss:$16 sps:$4 sm:$0xff]  }
  0xbf   :  { %1141 = vmatpush2.bf16.msra.mxu0 %v1938_v7  ;;  %v1973_v7 = vld [vmem:[#allocation14 + $0xec] ss:$16 sps:$4 sm:$0xff]  }
  0xc0   :  { %1182 = vmatpush2.bf16.msra.mxu1 %v1941_v8  ;;  %1142 = vmatprep.subr.bf16.mxu0 %v1946_v10  ;;  %v1968_v8 = vld [vmem:[#allocation14 + $0xe0] ss:$16 sps:$4 sm:$0xff]   ;;  %v1976_v10 = vld [vmem:[#allocation14 + $0xc4] ss:$16 sps:$4 sm:$0xff]  }
  0xc1   :  { %1183 = vmatprep.subr.bf16.mxu1 %v1949_v12  ;;  %v1974_v12 = vld [vmem:[#allocation14 + $0xc0] ss:$16 sps:$4 sm:$0xff]  }
  0xc3   :  { %1143 = vmatpush2.bf16.msra.mxu0 %v1944_v9  ;;  %v1971_v9 = vld [vmem:[#allocation14 + $0xe8] ss:$16 sps:$4 sm:$0xff]  }
  0xc4   :  { %1184 = vmatpush2.bf16.msra.mxu1 %v1947_v11  ;;  %1144 = vmatprep.subr.bf16.mxu0 %v1952_v13  ;;  %v1979_v11 = vld [vmem:[#allocation14 + $0xcc] ss:$16 sps:$4 sm:$0xff]   ;;  %v1977_v13 = vld [vmem:[#allocation14 + $0xc8] ss:$16 sps:$4 sm:$0xff]  }
  0xc5   :  { %1185 = vmatprep.subr.bf16.mxu1 %v1955_v14  ;;  %v1982_v14 = vld [vmem:[#allocation14 + $0xa4] ss:$16 sps:$4 sm:$0xff]  }
  0xc7   :  { %1145 = vmatpush2.bf16.msra.mxu0 %v1950_v15  ;;  %v1985_v15 = vld [vmem:[#allocation14 + $0xac] ss:$16 sps:$4 sm:$0xff]  }
  0xc8   :  { %1186 = vmatpush2.bf16.msra.mxu1 %v1953_v16  ;;  %1146 = vmatprep.subr.bf16.mxu0 %v1958_v17  ;;  %v1980_v16 = vld [vmem:[#allocation14 + $0xa0] ss:$16 sps:$4 sm:$0xff]   ;;  %v1983_v17 = vld [vmem:[#allocation14 + $0xa8] ss:$16 sps:$4 sm:$0xff]  }
  0xc9   :  { %1187 = vmatprep.subr.bf16.mxu1 %v1961_v18  ;;  %v1988_v18 = vld [vmem:[#allocation14 + $0x84] ss:$16 sps:$4 sm:$0xff]  }
  0xcb   :  { %1147 = vmatpush2.bf16.msra.mxu0 %v1956_v21  ;;  %v1989_v21 = vld [vmem:[#allocation14 + $0x88] ss:$16 sps:$4 sm:$0xff]  }
  0xcc   :  { %1188 = vmatpush2.bf16.msra.mxu1 %v1959_v22  ;;  %1148 = vmatprep.subr.bf16.mxu0 %v1964_v23  ;;  %v1994_v22 = vld [vmem:[#allocation14 + $0x64] ss:$16 sps:$4 sm:$0xff]   ;;  %v1997_v23 = vld [vmem:[#allocation14 + $0x6c] ss:$16 sps:$4 sm:$0xff]  }
  0xcd   :  { %1189 = vmatprep.subr.bf16.mxu1 %v1967_v24  ;;  %v1992_v24 = vld [vmem:[#allocation14 + $0x60] ss:$16 sps:$4 sm:$0xff]  }
  0xcf   :  { %1149 = vmatpush2.bf16.msra.mxu0 %v1962_v25  ;;  %v1995_v25 = vld [vmem:[#allocation14 + $0x68] ss:$16 sps:$4 sm:$0xff]  }
  0xd0   :  { %1190 = vmatpush2.bf16.msra.mxu1 %v1965_v26  ;;  %1445 = vmatprep.subr.bf16.mxu0 %v1970_v6  ;;  %v2000_v26 = vld [vmem:[#allocation14 + $0x44] ss:$16 sps:$4 sm:$0xff]  }
  0xd1   :  { %1486 = vmatprep.subr.bf16.mxu1 %v1973_v7 }
 0x152   :  { %v632_v34 = vpop.f32.mrf.mxu0 }
 0x153   :  { %v633_v35 = vadd.f32 %v632_v34, %v261_v32  ;;  %v673_v42 = vpop.f32.mrf.mxu1  ;;  %v2006_v32 = vld [vmem:[#allocation14 + $0x24] ss:$16 sps:$4 sm:$0xff]   ;;  %v2004_v34 = vld [vmem:[#allocation14 + $0x20] ss:$16 sps:$4 sm:$0xff]  }
 0x154   :  { %v634_v36 = vpop.f32.mrf.mxu0  ;;  %v674_v51 = vadd.f32 %v673_v42, %v269_v48  ;;  %v771_v42 = vld [vmem:[%s2443_s5] sm:$0xf]  ;;  %s2262_s5 = smov [#allocation17]  }
 0x155   :  { %v1659_v37 = vmul.f32 -1.442695, %v633_v35  ;;  %v635_v38 = vadd.f32 %v634_v36, %v265_v33  ;;  %v675_v45 = vpop.f32.mrf.mxu1  ;;  %v2009_v33 = vld [vmem:[#allocation14 + $0x2c] ss:$16 sps:$4 sm:$0xff]   ;;  %v2007_v35 = vld [vmem:[#allocation14 + $0x28] ss:$16 sps:$4 sm:$0xff]  }
 0x156   :  { %v636_v39 = vpop.f32.mrf.mxu0  ;;  %v676_v50 = vadd.f32 %v675_v45, %v273_v46  ;;  %v2012_v36 = vld [vmem:[#allocation14 + $0x4] ss:$16 sps:$4 sm:$0xff]   ;;  %v785_v45 = vrot.slane %v771_v42, %v2399_v31  ;;  %s1546_s15 = sshll.u32 %s2262_s5, 4  ;;  %s1547_s15 = int_to_ptr.vmem [resolvable:$true] %s1546_s15 }
 0x157   :  { %2016 = vpow2.f32 %v1659_v37  ;;  %v1660_v41 = vmul.f32 -1.442695, %v635_v38  ;;  %v677_v47 = vpop.f32.mrf.mxu1  ;;  %v2015_v37 = vld [vmem:[#allocation14 + $0xc] ss:$16 sps:$4 sm:$0xff]   ;;  %v2010_v38 = vld [vmem:[#allocation14] ss:$16 sps:$4 sm:$0xff]   ;;  %p2181_p3 = scmp.lt.s32.totalorder %s1547_s15, %s1547_s15 }
 0x158   :  { %v637_v43 = vpop.f32.mrf.mxu0  ;;  %v1661_v52 = vmul.f32 -1.442695, %v676_v50  ;;  %v2013_v39 = vld [vmem:[#allocation14 + $0x8] ss:$16 sps:$4 sm:$0xff]   ;;  %s2176_s16 = scalar_lea.vmem %s1547_s15, 256 }
 0x159   :  { %2018 = vpow2.f32 %v1660_v41  ;;  %v678_v49 = vpop.f32.mrf.mxu1  ;;  %v2261_v41 = vmov 0   ;;  %v781_v43 = vrot.slane %v771_v42, %v2394_v29  ;;  %p2177_p2 = scmp.ne.s32.totalorder %s1547_s15, %s2176_s16  ;;  %p2182_p4 = scmp.lt.s32.totalorder %s2176_s16, %s2176_s16 }
 0x15a   :  { %2020 = vtanh.f32 %v674_v51 }
 0x15b   :  { %2022 = vpow2.f32 %v1661_v52  ;;  %p2183_p5 = por %p2182_p4, %p2181_p3 }
 0x15d   :  { %p2184_p6 = pnand %p2183_p5, %p2177_p2 }
 0x164   :  { %v2017_v53 = vpop.eup %2016 }
 0x165   :  { %v683_v54 = vadd.f32 1.0, %v2017_v53 }
 0x166   :  { %v2019_v55 = vpop.eup %2018 }
 0x167   :  { %2024 = vrcp.f32 %v683_v54  ;;  %v689_v56 = vadd.f32 1.0, %v2019_v55  ;;  %v2021_v57 = vpop.eup %2020 }
 0x168   :  { %v2023_v58 = vpop.eup %2022 }
 0x169   :  { %2026 = vrcp.f32 %v689_v56  ;;  %v696_v62 = vadd.f32 1.0, %v2023_v58  ;;  %v793_v58 = vrot.slane %v771_v42, %v2403_v40 }
 0x16b   :  { %2028 = vrcp.f32 %v696_v62 }
 0x174   :  { %v2025_v59 = vpop.eup %2024 }
 0x175   :  { %v700_v0 = vmul.f32 %v2025_v59, %v2021_v57 }
 0x176   :  { %v2027_v61 = vpop.eup %2026 }
 0x177   :  { %v699_v63 = vmul.f32 %v2027_v61, %v255_v60  ;;  %v789_v60 = vrot.slane %v771_v42, %v2405_v44 }
 0x178   :  { %v2029_v2 = vpop.eup %2028 }
 0x179   :  { %v701_v1 = vadd.f32 %v700_v0, %v699_v63 }
 0x17b   :  { %2030 = vtanh.f32 %v701_v1  ;;  %705 = vst [vmem:[#allocation19] sm:$0xff] %v701_v1 }
 0x188   :  { %v2031_v3 = vpop.eup %2030 }
 0x189   :  { %v703_v4 = vmul.f32 %v2031_v3, %v2029_v2 }
 0x18b   :  { %v706_v5 = vpack.c.bf16 %v703_v4, %v703_v4  ;;  %704 = vst [vmem:[#allocation17] sm:$0xff] %v703_v4 }
 0x18d   :  { %1151 = vmatmul.mubr.bf16.vlgmr.msra.gmra.mxu0 %v706_v5  ;;  %1192 = vmatmul.mubr.bf16.vlgmr.msra.gmra.mxu1 %v706_v5  ;;  %v775_v5 = vld [vmem:[#allocation13 + $0x8] sm:$0xff] }
 0x18e   :  { %1446 = vmatpush1.bf16.msra.mxu0 %v1968_v8  ;;  %1487 = vmatpush1.bf16.msra.mxu1 %v1971_v9 }
 0x18f   :  { %1447 = vmatprep.subr.bf16.mxu0 %v1976_v10  ;;  %1488 = vmatprep.subr.bf16.mxu1 %v1979_v11 }
 0x190   :  { %1477 = vmatprep.mubr.bf16.mxu0 %v2261_v41  ;;  %1518 = vmatprep.mubr.bf16.mxu1 %v2261_v41 }
 0x192   :  { %1448 = vmatpush1.bf16.msra.mxu0 %v1974_v12  ;;  %1489 = vmatpush1.bf16.msra.mxu1 %v1977_v13 }
 0x193   :  { %1449 = vmatprep.subr.bf16.mxu0 %v1982_v14  ;;  %1490 = vmatprep.subr.bf16.mxu1 %v1985_v15 }
 0x196   :  { %1450 = vmatpush1.bf16.msra.mxu0 %v1980_v16  ;;  %1491 = vmatpush1.bf16.msra.mxu1 %v1983_v17 }
 0x197   :  { %1451 = vmatprep.subr.bf16.mxu0 %v1988_v18  ;;  %1492 = vmatprep.subr.bf16.mxu1 %v1991_v19 }
 0x19a   :  { %1452 = vmatpush1.bf16.msra.mxu0 %v1986_v20  ;;  %1493 = vmatpush1.bf16.msra.mxu1 %v1989_v21 }
 0x19b   :  { %1453 = vmatprep.subr.bf16.mxu0 %v1994_v22  ;;  %1494 = vmatprep.subr.bf16.mxu1 %v1997_v23 }
 0x19e   :  { %1454 = vmatpush1.bf16.msra.mxu0 %v1992_v24  ;;  %1495 = vmatpush1.bf16.msra.mxu1 %v1995_v25 }
 0x19f   :  { %1455 = vmatprep.subr.bf16.mxu0 %v2000_v26  ;;  %1496 = vmatprep.subr.bf16.mxu1 %v2003_v27 }
 0x1a2   :  { %1456 = vmatpush1.bf16.msra.mxu0 %v1998_v28  ;;  %1497 = vmatpush1.bf16.msra.mxu1 %v2001_v30 }
 0x1a3   :  { %1457 = vmatprep.subr.bf16.mxu0 %v2006_v32  ;;  %1498 = vmatprep.subr.bf16.mxu1 %v2009_v33 }
 0x1a6   :  { %1458 = vmatpush1.bf16.msra.mxu0 %v2004_v34  ;;  %1499 = vmatpush1.bf16.msra.mxu1 %v2007_v35 }
 0x1a7   :  { %1459 = vmatprep.subr.bf16.mxu0 %v2012_v36  ;;  %1500 = vmatprep.subr.bf16.mxu1 %v2015_v37 }
 0x1aa   :  { %1460 = vmatpush1.bf16.msra.mxu0 %v2010_v38  ;;  %1501 = vmatpush1.bf16.msra.mxu1 %v2013_v39 }
 0x24d   :  { %v1152_v46 = vpop.f32.mrf.mxu0  ;;  %v1193_v47 = vpop.f32.mrf.mxu1 }
 0x24e   :  { %v1153_v48 = vadd.f32 %v1152_v46, %v781_v43  ;;  %v1194_v63 = vadd.f32 %v1193_v47, %v789_v60 }
 0x24f   :  { %v1154_v49 = vpop.f32.mrf.mxu0  ;;  %v1195_v50 = vpop.f32.mrf.mxu1 }
 0x250   :  { %v1726_v51 = vmul.f32 -1.442695, %v1153_v48  ;;  %v1155_v52 = vadd.f32 %v1154_v49, %v785_v45  ;;  %v1196_v59 = vadd.f32 %v1195_v50, %v793_v58 }
 0x251   :  { %v1156_v53 = vpop.f32.mrf.mxu0  ;;  %v1197_v54 = vpop.f32.mrf.mxu1 }
 0x252   :  { %2032 = vpow2.f32 %v1726_v51  ;;  %v1727_v55 = vmul.f32 -1.442695, %v1155_v52  ;;  %v1728_v61 = vmul.f32 -1.442695, %v1196_v59 }
 0x253   :  { %v1157_v56 = vpop.f32.mrf.mxu0  ;;  %v1198_v57 = vpop.f32.mrf.mxu1 }
 0x254   :  { %2034 = vpow2.f32 %v1727_v55 }
 0x255   :  { %2036 = vpow2.f32 %v1728_v61 }
 0x25f   :  { %v2033_v62 = vpop.eup %2032 }
 0x260   :  { %v1203_v0 = vadd.f32 1.0, %v2033_v62 }
 0x261   :  { %v2035_v1 = vpop.eup %2034 }
 0x262   :  { %2038 = vrcp.f32 %v1203_v0  ;;  %v1209_v2 = vadd.f32 1.0, %v2035_v1  ;;  %v2037_v3 = vpop.eup %2036 }
 0x263   :  { %2040 = vtanh.f32 %v1194_v63  ;;  %v1216_v8 = vadd.f32 1.0, %v2037_v3 }
 0x264   :  { %2042 = vrcp.f32 %v1209_v2 }
 0x265   :  { %2044 = vrcp.f32 %v1216_v8 }
 0x26f   :  { %v2039_v4 = vpop.eup %2038 }
 0x270   :  { %v2041_v6 = vpop.eup %2040 }
 0x271   :  { %v2043_v7 = vpop.eup %2042  ;;  %v1220_v9 = vmul.f32 %v2041_v6, %v2039_v4 }
 0x272   :  { %v1219_v10 = vmul.f32 %v2043_v7, %v775_v5  ;;  %v2045_v12 = vpop.eup %2044 }
 0x274   :  { %v1221_v11 = vadd.f32 %v1220_v9, %v1219_v10 }
 0x276   :  { %2046 = vtanh.f32 %v1221_v11  ;;  %1227 = vst [vmem:[#allocation19 + $0x8] sm:$0xff] %v1221_v11 }
 0x283   :  { %v2047_v13 = vpop.eup %2046 }
 0x284   :  { %v1223_v14 = vmul.f32 %v2047_v13, %v2045_v12 }
 0x286   :  { %v1228_v15 = vpack.c.bf16 %v1223_v14, %v1223_v14  ;;  %1225 = vst [vmem:[#allocation17 + $0x8] sm:$0xff] %v1223_v14 }
 0x288   :  { %1229 = vst [vmem:[#allocation2] sm:$0xf] %v1228_v15 }
 0x28f   :  { %v1230_v16 = vld [vmem:[#allocation2] sm:$0xf] }
 0x290   :  { %1478 = vmatmul.mubr.bf16.vlgmr.msra.gmra.mxu0 %v1230_v16  ;;  %1519 = vmatmul.mubr.bf16.vlgmr.msra.gmra.mxu1 %v1230_v16 }
 0x291   :  { %2187 = shalt.err (!%p2184_p6)
}
 0x292   :  { %1552 = dma.vmem_to_hbm [thread:$0]  %s1547_s15, 256, %s2449_s11, [#allocation18], %s2256_s17, %s2256_s17, %s2257_s18  }
 0x293   :  { %s2263_s7 = smov [#allocation19]  }
 0x294   :  { %s1558_s8 = sshll.u32 %s2263_s7, 4  ;;  %s1559_s8 = int_to_ptr.vmem [resolvable:$true] %s1558_s8 }
 0x295   :  { %s2196_s0 = scalar_lea.vmem %s1559_s8, 256  ;;  %p2201_p8 = scmp.lt.s32.totalorder %s1559_s8, %s1559_s8 }
 0x296   :  { %p2197_p7 = scmp.ne.s32.totalorder %s1559_s8, %s2196_s0  ;;  %p2202_p9 = scmp.lt.s32.totalorder %s2196_s0, %s2196_s0 }
 0x298   :  { %p2203_p10 = por %p2202_p9, %p2201_p8 }
 0x29a   :  { %p2204_p11 = pnand %p2203_p10, %p2197_p7 }
 0x29c   :  { %2207 = shalt.err (!%p2204_p11)
}
 0x29d   :  { %1564 = dma.vmem_to_hbm [thread:$0]  %s1559_s8, 256, %s2450_s12, [#allocation18], %s2256_s17, %s2256_s17, %s2257_s18  }
 0x29e   :  { %v1263_v17 = vld [vmem:[%s2447_s9] sm:$0xf]  ;;  %s2264_s11 = smov [#allocation16]  }
 0x29f   :  { %v1268_v18 = vrot.slane %v1263_v17, %v2394_v29  ;;  %v1276_v19 = vrot.slane %v1263_v17, %v2405_v44  ;;  %v1272_v20 = vrot.slane %v1263_v17, %v2399_v31  ;;  %v1280_v21 = vrot.slane %v1263_v17, %v2403_v40  ;;  %s1537_s22 = sshll.u32 %s2264_s11, 4  ;;  %s1538_s22 = int_to_ptr.vmem [resolvable:$true] %s1537_s22 }
 0x2a0   :  { %s2216_s9 = scalar_lea.vmem %s1538_s22, 512  ;;  %p2221_p13 = scmp.lt.s32.totalorder %s1538_s22, %s1538_s22 }
 0x2a1   :  { %p2217_p12 = scmp.ne.s32.totalorder %s1538_s22, %s2216_s9  ;;  %p2222_p0 = scmp.lt.s32.totalorder %s2216_s9, %s2216_s9 }
 0x2a3   :  { %p2223_p1 = por %p2222_p0, %p2221_p13 }
 0x2a5   :  { %p2224_p2 = pnand %p2223_p1, %p2217_p12 }
 0x350   :  { %v1479_v22 = vpop.f32.mrf.mxu0  ;;  %v1520_v23 = vpop.f32.mrf.mxu1 }
 0x351   :  { %v1480_v24 = vadd.f32 %v1479_v22, %v1268_v18  ;;  %v1521_v25 = vadd.f32 %v1520_v23, %v1276_v19 }
 0x352   :  { %v1481_v26 = vpop.f32.mrf.mxu0  ;;  %v1522_v27 = vpop.f32.mrf.mxu1 }
 0x353   :  { %1527 = vst [vmem:[#allocation16] sm:$0xff] %v1480_v24  ;;  %1529 = vst [vmem:[#allocation16 + $0x10] sm:$0xff] %v1521_v25  ;;  %v1482_v28 = vadd.f32 %v1481_v26, %v1272_v20  ;;  %v1523_v30 = vadd.f32 %v1522_v27, %v1280_v21 }
 0x354   :  { %v1483_v29 = vpop.f32.mrf.mxu0  ;;  %v1524_v32 = vpop.f32.mrf.mxu1 }
 0x355   :  { %1528 = vst [vmem:[#allocation16 + $0x8] sm:$0xff] %v1482_v28  ;;  %1530 = vst [vmem:[#allocation16 + $0x18] sm:$0xff] %v1523_v30 }
 0x356   :  { %v1484_v31 = vpop.f32.mrf.mxu0  ;;  %v1525_v44 = vpop.f32.mrf.mxu1 }
 0x357   :  { %2227 = shalt.err (!%p2224_p2)
}
 0x358   :  { %1540 = dma.vmem_to_hbm [thread:$0]  %s1538_s22, 512, %s2448_s10, [#allocation7]  }
 0x359   :  { %2246 = dma.done.wait [#allocation7], 512  }
 0x35a   :  { %2247 = vsyncadd [#allocation7], 4294966784 }
 0x35b   :  { %2248 = dma.done.wait [#allocation18], 512  }
 0x35c   :  { %2249 = vsyncadd [#allocation18], 4294966784 }
 0x35d   :  { %1574 = vsyncpa [#allocation6], 1 }
 0x35e   :  { %1575 = vsyncpa [#allocation9], 1 }
 0x35f   :  { %1576 = vsyncpa [#allocation12], 1 }
 0x360   :  { %1577 = vsyncpa [#allocation15], 1 }
 0x361   :  { %1578 = vsyncpa [#allocation7], 1 }
 0x362   :  { %1579 = vsyncpa [#allocation18], 1 }

</bundles_post_ra>
